<compile_context>
chip_gen: v5e
topology: v5e:2x2
jax: 0.10.0
libtpu: 0.0.40
codegen_flags: <defaults>
</compile_context>

<pallas_src>
import jax
import jax.numpy as jnp
import numpy as np
from jax.experimental import pallas as pl
from jax.experimental.pallas import tpu as pltpu

# ---------------- model dimensions (small, deterministic, synthetic) -------------
M = 2           # batch ("m")
N = 8           # sequence length ("n")
DX = 32         # embed_dim ("dx")
DT = 2          # location dim ("dt")
H = 4           # num heads
DH = 8          # head dim
INNER = H * DH  # = 32
DFF = 32        # feedforward dim (defaults to embed_dim)
PHI_HID = 16    # hidden width of the phi MLP on pairwise t differences
EPS = 1e-5
SCALE = DH ** -0.5


# ---------------------------------- kernel ---------------------------------------
def _te_layer_kernel(
    x_ref, t_ref,
    wqkv_ref, wo_ref, wf1_ref, wf2_ref,      # bf16 weights
    w1p_ref, w2pblk_ref,                     # phi MLP weights (w2p block-diagonalized)
    b1prep_ref, vecs_ref,                    # pre-tiled b1p, packed 1-row vectors
    ox_ref,
):
    mb = x_ref.shape[0]                      # batch elements handled by this step

    # packed 1-row vectors: [bo, bf1, bf2, g1, be1, g2, be2, b2p_rep]
    bo = vecs_ref[0:1, :]
    bf1 = vecs_ref[1:2, :]
    bf2 = vecs_ref[2:3, :]
    g1 = vecs_ref[3:4, :]
    be1 = vecs_ref[4:5, :]
    g2 = vecs_ref[5:6, :]
    be2 = vecs_ref[6:7, :]
    b2p_rep = vecs_ref[7:8, :]               # (1, H*N): b2p[h] repeated N times
    b1p_rep = b1prep_ref[...]                # (1, N*PHI_HID): b1p tiled N times

    # ---- fused qkv projection over all tokens of this grid step ----
    x2d = x_ref[...].reshape(mb * N, DX)                       # free reshape
    qkv = jnp.dot(x2d.astype(jnp.bfloat16), wqkv_ref[...],
                  preferred_element_type=jnp.float32)          # (mb*N, 3*INNER) f32

    head_rows = []
    for b in range(mb):
        # ---- translation-equivariant bias via MXU -------------------------------
        # A[i, u] = sum_c t[i, c] * w1p[c, u]  (first phi layer is linear in t_i-t_j)
        t_b = t_ref[b]                                          # (N, DT)
        A = jnp.dot(t_b, w1p_ref[...],
                    preferred_element_type=jnp.float32)         # (N, PHI_HID)
        # hid[i, j*PHI_HID+u] = relu(A[i,u] - A[j,u] + b1p[u])   -> (N, 128)
        a_rep = jnp.concatenate([A] * N, axis=1)                # [i, j*P+u] = A[i,u]
        k_row = jnp.concatenate([A[j:j + 1, :] for j in range(N)], axis=1)  # A[j,u]
        hid = jnp.maximum(a_rep - k_row + b1p_rep, 0.0)         # (N, N*PHI_HID)
        # bias_all[i, h*N+j] = sum_u hid[i, j*P+u] * w2p[u, h] + b2p[h]
        bias_all = jnp.dot(hid.astype(jnp.bfloat16), w2pblk_ref[...],
                           preferred_element_type=jnp.float32) + b2p_rep    # (N, H*N)

        qkv_b = qkv[b * N:(b + 1) * N, :].astype(jnp.bfloat16)  # (N, 3*INNER)
        q_b = qkv_b[:, 0:INNER]
        k_b = qkv_b[:, INNER:2 * INNER]
        v_b = qkv_b[:, 2 * INNER:3 * INNER]

        outs = []
        for hh in range(H):
            lo, hi = hh * DH, (hh + 1) * DH
            qh, kh, vh = q_b[:, lo:hi], k_b[:, lo:hi], v_b[:, lo:hi]
            s = jax.lax.dot_general(
                qh, kh, (((1,), (1,)), ((), ())),
                preferred_element_type=jnp.float32) * SCALE     # (N, N)
            s = s + bias_all[:, hh * N:(hh + 1) * N]            # contiguous lane slice
            smax = jnp.max(s, axis=-1, keepdims=True)
            p = jnp.exp(s - smax)
            denom = jnp.sum(p, axis=-1, keepdims=True)
            attn = p * pl.reciprocal(denom, approx=True)        # EUP, not VALU divide
            outs.append(jnp.dot(attn.astype(jnp.bfloat16), vh,
                                preferred_element_type=jnp.float32))  # (N, DH)
        head_rows.append(jnp.concatenate(outs, axis=1))         # (N, INNER)

    attn_all = head_rows[0] if mb == 1 else jnp.concatenate(head_rows, axis=0)
    # single fused output projection
    x_attn = jnp.dot(attn_all.astype(jnp.bfloat16), wo_ref[...],
                     preferred_element_type=jnp.float32) + bo   # (mb*N, DX)

    def layer_norm(z, g, b):
        mu = jnp.mean(z, axis=-1, keepdims=True)
        var = jnp.mean((z - mu) ** 2, axis=-1, keepdims=True)
        return (z - mu) * jax.lax.rsqrt(var + EPS) * g + b

    # ---- norm_first = False path ----
    x1 = x_attn + layer_norm(x_attn, g1, be1)
    h1 = jnp.maximum(
        jnp.dot(x1.astype(jnp.bfloat16), wf1_ref[...],
                preferred_element_type=jnp.float32) + bf1, 0.0)
    ff = jnp.dot(h1.astype(jnp.bfloat16), wf2_ref[...],
                 preferred_element_type=jnp.float32) + bf2
    x2 = layer_norm(x1 + ff, g2, be2)

    ox_ref[...] = x2


# --------------------------------- wrapper ----------------------------------------
def _const_spec(arr):
    nd = arr.ndim
    return pl.BlockSpec(arr.shape, lambda i, _nd=nd: (0,) * _nd)


def _pick_batch_block(m):
    # single-TC chips (v5e/v6e): fold the batch into one grid step;
    # dual-TC v7x: one batch element per grid step so both cores are used.
    try:
        kind = jax.devices()[0].device_kind.lower()
    except Exception:
        kind = ""
    dual_tc = ("v7" in kind) or ("7x" in kind)
    if dual_tc and m > 1:
        return 1
    return m


def multi_head_self_te_attention_layer(x, t, params):
    m, n, dx = x.shape
    dt = t.shape[-1]
    assert (n, dx, dt) == (N, DX, DT)
    assert H * N == DX and DFF == DX          # packing assumption for `vecs`
    mb = _pick_batch_block(m)

    f32, bf16 = jnp.float32, jnp.bfloat16

    # ---- parameter packing / preprocessing (parameter-only, done once) ----
    wqkv = jnp.concatenate([params['wq'], params['wk'], params['wv']], axis=1).astype(bf16)
    wo = params['wo'].astype(bf16)
    wf1 = params['wf1'].astype(bf16)
    wf2 = params['wf2'].astype(bf16)
    w1p = params['w1p'].astype(f32)
    # block-diagonalized second phi layer: w2p_blk[j*P+u, h*N+j'] = w2p[u,h]*delta(j,j')
    eye_n = jnp.eye(N, dtype=f32)
    w2p_blk = (eye_n[:, None, None, :] * params['w2p'][None, :, :, None]
               ).reshape(N * PHI_HID, H * N).astype(bf16)
    b1p_rep = jnp.tile(params['b1p'].astype(f32), N).reshape(1, N * PHI_HID)
    b2p_rep = jnp.repeat(params['b2p'].astype(f32), N).reshape(1, H * N)
    vecs = jnp.concatenate(
        [params['bo'], params['bf1'], params['bf2'], params['g1'],
         params['be1'], params['g2'], params['be2'], b2p_rep], axis=0).astype(f32)

    in_specs = [
        pl.BlockSpec((mb, n, dx), lambda i: (i, 0, 0)),   # x
        pl.BlockSpec((mb, n, dt), lambda i: (i, 0, 0)),   # t
        _const_spec(wqkv), _const_spec(wo), _const_spec(wf1), _const_spec(wf2),
        _const_spec(w1p), _const_spec(w2p_blk),
        _const_spec(b1p_rep), _const_spec(vecs),
    ]
    out_spec = pl.BlockSpec((mb * n, dx), lambda i: (i, 0))

    fn = pl.pallas_call(
        _te_layer_kernel,
        grid=(m // mb,),
        in_specs=in_specs,
        out_specs=out_spec,
        out_shape=jax.ShapeDtypeStruct((m * n, dx), jnp.float32),
        compiler_params=pltpu.CompilerParams(dimension_semantics=("parallel",)),
    )
    x_out = fn(x, t, wqkv, wo, wf1, wf2, w1p, w2p_blk, b1p_rep, vecs)
    # t passes through self-attention unchanged -> return it directly (no kernel I/O).
    return x_out.reshape(m, n, dx), t


# ------------------------------ pure-JAX reference --------------------------------
def reference(x, t, p):
    q = (x @ p['wq']).reshape(M, N, H, DH).transpose(0, 2, 1, 3)
    k = (x @ p['wk']).reshape(M, N, H, DH).transpose(0, 2, 1, 3)
    v = (x @ p['wv']).reshape(M, N, H, DH).transpose(0, 2, 1, 3)
    diff = t[:, :, None, :] - t[:, None, :, :]                      # (m, n, n, dt)
    hid = jax.nn.relu(diff @ p['w1p'] + p['b1p'])                   # (m, n, n, PHI_HID)
    bias = (hid @ p['w2p'] + p['b2p']).transpose(0, 3, 1, 2)        # (m, H, n, n)
    scores = jnp.einsum('mhqd,mhkd->mhqk', q, k) * SCALE + bias
    smax = jnp.max(scores, axis=-1, keepdims=True)
    e = jnp.exp(scores - smax)
    attn = e / jnp.sum(e, axis=-1, keepdims=True)
    out = jnp.einsum('mhqk,mhkd->mhqd', attn, v).transpose(0, 2, 1, 3).reshape(M, N, INNER)
    x_attn = out @ p['wo'] + p['bo']

    def ln(z, g, b):
        mu = jnp.mean(z, axis=-1, keepdims=True)
        var = jnp.mean((z - mu) ** 2, axis=-1, keepdims=True)
        return (z - mu) * jax.lax.rsqrt(var + EPS) * g + b

    x1 = x_attn + ln(x_attn, p['g1'], p['be1'])
    ff = jax.nn.relu(x1 @ p['wf1'] + p['bf1']) @ p['wf2'] + p['bf2']
    x2 = ln(x1 + ff, p['g2'], p['be2'])
    return x2, t


# ----------------------------------- main ------------------------------------------
if __name__ == "__main__":
    key = jax.random.PRNGKey(0)
    keys = jax.random.split(key, 16)

    def init(k, shape, fan_in):
        return (jax.random.normal(k, shape, jnp.float32) / np.sqrt(fan_in)).astype(jnp.float32)

    params = dict(
        wq=init(keys[0], (DX, INNER), DX),
        wk=init(keys[1], (DX, INNER), DX),
        wv=init(keys[2], (DX, INNER), DX),
        wo=init(keys[3], (INNER, DX), INNER),
        bo=init(keys[4], (1, DX), INNER),
        w1p=init(keys[5], (DT, PHI_HID), DT),
        b1p=init(keys[6], (PHI_HID,), 1),
        w2p=init(keys[7], (PHI_HID, H), PHI_HID),
        b2p=init(keys[8], (H,), 1),
        wf1=init(keys[9], (DX, DFF), DX),
        bf1=init(keys[10], (1, DFF), DX),
        wf2=init(keys[11], (DFF, DX), DFF),
        bf2=init(keys[12], (1, DX), DFF),
        g1=jnp.ones((1, DX), jnp.float32),
        be1=jnp.zeros((1, DX), jnp.float32),
        g2=jnp.ones((1, DX), jnp.float32),
        be2=jnp.zeros((1, DX), jnp.float32),
    )

    x = jax.random.normal(keys[13], (M, N, DX), jnp.float32)
    t = jax.random.normal(keys[14], (M, N, DT), jnp.float32)

    x_out, t_out = multi_head_self_te_attention_layer(x, t, params)
    jax.block_until_ready((x_out, t_out))

    x_ref, t_ref = reference(x, t, params)
    # tolerance chosen deliberately loose because MXU operands are bf16 (f32 accumulate)
    np.testing.assert_allclose(np.asarray(x_out), np.asarray(x_ref), rtol=5e-2, atol=5e-2)
    np.testing.assert_allclose(np.asarray(t_out), np.asarray(t_ref), rtol=1e-6, atol=1e-6)

    print("KERNEL_OK")
</pallas_src>

<mosaic_0001>
module attributes {stable_mosaic.version = 11 : i64} {
  func.func @_te_layer_kernel(%arg0: i32, %arg1: memref<2x8x32xf32, #tpu.memory_space<vmem>>, %arg2: memref<2x8x2xf32, #tpu.memory_space<vmem>>, %arg3: memref<32x96xbf16, #tpu.memory_space<vmem>>, %arg4: memref<32x32xbf16, #tpu.memory_space<vmem>>, %arg5: memref<32x32xbf16, #tpu.memory_space<vmem>>, %arg6: memref<32x32xbf16, #tpu.memory_space<vmem>>, %arg7: memref<2x16xf32, #tpu.memory_space<vmem>>, %arg8: memref<128x32xbf16, #tpu.memory_space<vmem>>, %arg9: memref<1x128xf32, #tpu.memory_space<vmem>>, %arg10: memref<8x32xf32, #tpu.memory_space<vmem>>, %arg11: memref<16x32xf32, #tpu.memory_space<vmem>>) attributes {dimension_semantics = [#tpu.dimension_semantics<parallel>], iteration_bounds = array<i64: 1>, scalar_prefetch = 0 : i64, scratch_operands = 0 : i64, tpu.core_type = #tpu.core_type<tc>, window_params = [{transform_indices = @transform_0, window_bounds = array<i64: 2, 8, 32>}, {transform_indices = @transform_1, window_bounds = array<i64: 2, 8, 2>}, {pipeline_mode = #tpu.pipeline_mode<synchronous>, transform_indices = @transform_2, window_bounds = array<i64: 32, 96>}, {pipeline_mode = #tpu.pipeline_mode<synchronous>, transform_indices = @transform_3, window_bounds = array<i64: 32, 32>}, {pipeline_mode = #tpu.pipeline_mode<synchronous>, transform_indices = @transform_4, window_bounds = array<i64: 32, 32>}, {pipeline_mode = #tpu.pipeline_mode<synchronous>, transform_indices = @transform_5, window_bounds = array<i64: 32, 32>}, {pipeline_mode = #tpu.pipeline_mode<synchronous>, transform_indices = @transform_6, window_bounds = array<i64: 2, 16>}, {pipeline_mode = #tpu.pipeline_mode<synchronous>, transform_indices = @transform_7, window_bounds = array<i64: 128, 32>}, {pipeline_mode = #tpu.pipeline_mode<synchronous>, transform_indices = @transform_8, window_bounds = array<i64: 1, 128>}, {pipeline_mode = #tpu.pipeline_mode<synchronous>, transform_indices = @transform_9, window_bounds = array<i64: 8, 32>}, {transform_indices = @transform_10, window_bounds = array<i64: 16, 32>}]} {
    %c0 = arith.constant 0 : index
    %c0_0 = arith.constant 0 : index
    %0 = vector.load %arg10[%c0, %c0_0] : memref<8x32xf32, #tpu.memory_space<vmem>>, vector<1x32xf32>
    %c1 = arith.constant 1 : index
    %c0_1 = arith.constant 0 : index
    %1 = vector.load %arg10[%c1, %c0_1] : memref<8x32xf32, #tpu.memory_space<vmem>>, vector<1x32xf32>
    %c2 = arith.constant 2 : index
    %c0_2 = arith.constant 0 : index
    %2 = vector.load %arg10[%c2, %c0_2] : memref<8x32xf32, #tpu.memory_space<vmem>>, vector<1x32xf32>
    %c3 = arith.constant 3 : index
    %c0_3 = arith.constant 0 : index
    %3 = vector.load %arg10[%c3, %c0_3] : memref<8x32xf32, #tpu.memory_space<vmem>>, vector<1x32xf32>
    %c4 = arith.constant 4 : index
    %c0_4 = arith.constant 0 : index
    %4 = vector.load %arg10[%c4, %c0_4] : memref<8x32xf32, #tpu.memory_space<vmem>>, vector<1x32xf32>
    %c5 = arith.constant 5 : index
    %c0_5 = arith.constant 0 : index
    %5 = vector.load %arg10[%c5, %c0_5] : memref<8x32xf32, #tpu.memory_space<vmem>>, vector<1x32xf32>
    %c6 = arith.constant 6 : index
    %c0_6 = arith.constant 0 : index
    %6 = vector.load %arg10[%c6, %c0_6] : memref<8x32xf32, #tpu.memory_space<vmem>>, vector<1x32xf32>
    %c7 = arith.constant 7 : index
    %c0_7 = arith.constant 0 : index
    %7 = vector.load %arg10[%c7, %c0_7] : memref<8x32xf32, #tpu.memory_space<vmem>>, vector<1x32xf32>
    %c0_8 = arith.constant 0 : index
    %c0_9 = arith.constant 0 : index
    %8 = vector.load %arg9[%c0_8, %c0_9] : memref<1x128xf32, #tpu.memory_space<vmem>>, vector<1x128xf32>
    %c0_10 = arith.constant 0 : index
    %c0_11 = arith.constant 0 : index
    %c0_12 = arith.constant 0 : index
    %9 = vector.load %arg1[%c0_10, %c0_11, %c0_12] : memref<2x8x32xf32, #tpu.memory_space<vmem>>, vector<2x8x32xf32>
    %10 = vector.shape_cast %9 : vector<2x8x32xf32> to vector<16x32xf32>
    %11 = arith.truncf %10 : vector<16x32xf32> to vector<16x32xbf16>
    %c0_13 = arith.constant 0 : index
    %c0_14 = arith.constant 0 : index
    %12 = vector.load %arg3[%c0_13, %c0_14] : memref<32x96xbf16, #tpu.memory_space<vmem>>, vector<32x96xbf16>
    %cst = arith.constant dense<0.000000e+00> : vector<16x96xf32>
    %13 = tpu.matmul %11, %12, %cst {dimension_numbers = #tpu.dot_dimension_numbers<[1], [0], [0], [1], [0, 0, 1, 1], [], []>} : vector<16x32xbf16>, vector<32x96xbf16>, vector<16x96xf32> -> vector<16x96xf32>
    %c0_15 = arith.constant 0 : index
    %c0_16 = arith.constant 0 : index
    %c0_17 = arith.constant 0 : index
    %14 = vector.load %arg2[%c0_15, %c0_16, %c0_17] : memref<2x8x2xf32, #tpu.memory_space<vmem>>, vector<1x8x2xf32>
    %15 = vector.shape_cast %14 : vector<1x8x2xf32> to vector<8x2xf32>
    %c0_18 = arith.constant 0 : index
    %c0_19 = arith.constant 0 : index
    %16 = vector.load %arg7[%c0_18, %c0_19] : memref<2x16xf32, #tpu.memory_space<vmem>>, vector<2x16xf32>
    %cst_20 = arith.constant dense<0.000000e+00> : vector<8x16xf32>
    %17 = tpu.matmul %15, %16, %cst_20 {dimension_numbers = #tpu.dot_dimension_numbers<[1], [0], [0], [1], [0, 0, 1, 1], [], []>} : vector<8x2xf32>, vector<2x16xf32>, vector<8x16xf32> -> vector<8x16xf32>
    %18 = tpu.concatenate %17, %17, %17, %17, %17, %17, %17, %17 in 1 : vector<8x16xf32>, vector<8x16xf32>, vector<8x16xf32>, vector<8x16xf32>, vector<8x16xf32>, vector<8x16xf32>, vector<8x16xf32>, vector<8x16xf32> -> vector<8x128xf32>
    %19 = vector.extract_strided_slice %17 {offsets = [0, 0], sizes = [1, 16], strides = [1, 1]} : vector<8x16xf32> to vector<1x16xf32>
    %20 = vector.extract_strided_slice %17 {offsets = [1, 0], sizes = [1, 16], strides = [1, 1]} : vector<8x16xf32> to vector<1x16xf32>
    %21 = vector.extract_strided_slice %17 {offsets = [2, 0], sizes = [1, 16], strides = [1, 1]} : vector<8x16xf32> to vector<1x16xf32>
    %22 = vector.extract_strided_slice %17 {offsets = [3, 0], sizes = [1, 16], strides = [1, 1]} : vector<8x16xf32> to vector<1x16xf32>
    %23 = vector.extract_strided_slice %17 {offsets = [4, 0], sizes = [1, 16], strides = [1, 1]} : vector<8x16xf32> to vector<1x16xf32>
    %24 = vector.extract_strided_slice %17 {offsets = [5, 0], sizes = [1, 16], strides = [1, 1]} : vector<8x16xf32> to vector<1x16xf32>
    %25 = vector.extract_strided_slice %17 {offsets = [6, 0], sizes = [1, 16], strides = [1, 1]} : vector<8x16xf32> to vector<1x16xf32>
    %26 = vector.extract_strided_slice %17 {offsets = [7, 0], sizes = [1, 16], strides = [1, 1]} : vector<8x16xf32> to vector<1x16xf32>
    %27 = tpu.concatenate %19, %20, %21, %22, %23, %24, %25, %26 in 1 : vector<1x16xf32>, vector<1x16xf32>, vector<1x16xf32>, vector<1x16xf32>, vector<1x16xf32>, vector<1x16xf32>, vector<1x16xf32>, vector<1x16xf32> -> vector<1x128xf32>
    %28 = vector.broadcast %27 : vector<1x128xf32> to vector<8x128xf32>
    %29 = arith.subf %18, %28 : vector<8x128xf32>
    %30 = vector.broadcast %8 : vector<1x128xf32> to vector<8x128xf32>
    %31 = arith.addf %29, %30 : vector<8x128xf32>
    %cst_21 = arith.constant 0.000000e+00 : f32
    %32 = vector.broadcast %cst_21 : f32 to vector<8x128xf32>
    %33 = arith.maximumf %31, %32 : vector<8x128xf32>
    %34 = arith.truncf %33 : vector<8x128xf32> to vector<8x128xbf16>
    %c0_22 = arith.constant 0 : index
    %c0_23 = arith.constant 0 : index
    %35 = vector.load %arg8[%c0_22, %c0_23] : memref<128x32xbf16, #tpu.memory_space<vmem>>, vector<128x32xbf16>
    %cst_24 = arith.constant dense<0.000000e+00> : vector<8x32xf32>
    %36 = tpu.matmul %34, %35, %cst_24 {dimension_numbers = #tpu.dot_dimension_numbers<[1], [0], [0], [1], [0, 0, 1, 1], [], []>} : vector<8x128xbf16>, vector<128x32xbf16>, vector<8x32xf32> -> vector<8x32xf32>
    %37 = vector.broadcast %7 : vector<1x32xf32> to vector<8x32xf32>
    %38 = arith.addf %36, %37 : vector<8x32xf32>
    %39 = vector.extract_strided_slice %13 {offsets = [0, 0], sizes = [8, 96], strides = [1, 1]} : vector<16x96xf32> to vector<8x96xf32>
    %40 = arith.truncf %39 : vector<8x96xf32> to vector<8x96xbf16>
    %41 = vector.extract_strided_slice %40 {offsets = [0, 0], sizes = [8, 32], strides = [1, 1]} : vector<8x96xbf16> to vector<8x32xbf16>
    %42 = vector.extract_strided_slice %40 {offsets = [0, 32], sizes = [8, 32], strides = [1, 1]} : vector<8x96xbf16> to vector<8x32xbf16>
    %43 = vector.extract_strided_slice %40 {offsets = [0, 64], sizes = [8, 32], strides = [1, 1]} : vector<8x96xbf16> to vector<8x32xbf16>
    %44 = vector.extract_strided_slice %41 {offsets = [0, 0], sizes = [8, 8], strides = [1, 1]} : vector<8x32xbf16> to vector<8x8xbf16>
    %45 = vector.extract_strided_slice %42 {offsets = [0, 0], sizes = [8, 8], strides = [1, 1]} : vector<8x32xbf16> to vector<8x8xbf16>
    %46 = vector.extract_strided_slice %43 {offsets = [0, 0], sizes = [8, 8], strides = [1, 1]} : vector<8x32xbf16> to vector<8x8xbf16>
    %cst_25 = arith.constant dense<0.000000e+00> : vector<8x8xf32>
    %47 = tpu.matmul %44, %45, %cst_25 {dimension_numbers = #tpu.dot_dimension_numbers<[1], [1], [0], [0], [0, 0, 1, 0], [], []>} : vector<8x8xbf16>, vector<8x8xbf16>, vector<8x8xf32> -> vector<8x8xf32>
    %cst_26 = arith.constant 0.353553385 : f32
    %48 = vector.broadcast %cst_26 : f32 to vector<8x8xf32>
    %49 = arith.mulf %47, %48 : vector<8x8xf32>
    %50 = vector.extract_strided_slice %38 {offsets = [0, 0], sizes = [8, 8], strides = [1, 1]} : vector<8x32xf32> to vector<8x8xf32>
    %51 = arith.addf %49, %50 : vector<8x8xf32>
    %cst_27 = arith.constant dense<0xFF800000> : vector<8xf32>
    %52 = vector.multi_reduction <maximumf>, %51, %cst_27 [1] : vector<8x8xf32> to vector<8xf32>
    %53 = vector.shape_cast %52 : vector<8xf32> to vector<8x1xf32>
    %54 = vector.broadcast %53 : vector<8x1xf32> to vector<8x8xf32>
    %55 = arith.subf %51, %54 : vector<8x8xf32>
    %56 = math.exp %55 : vector<8x8xf32>
    %cst_28 = arith.constant dense<0.000000e+00> : vector<8xf32>
    %57 = vector.multi_reduction <add>, %56, %cst_28 [1] : vector<8x8xf32> to vector<8xf32>
    %58 = vector.shape_cast %57 : vector<8xf32> to vector<8x1xf32>
    %59 = tpu.reciprocal %58 {approx = true} : vector<8x1xf32> -> vector<8x1xf32>
    %60 = vector.broadcast %59 : vector<8x1xf32> to vector<8x8xf32>
    %61 = arith.mulf %56, %60 : vector<8x8xf32>
    %62 = arith.truncf %61 : vector<8x8xf32> to vector<8x8xbf16>
    %cst_29 = arith.constant dense<0.000000e+00> : vector<8x8xf32>
    %63 = tpu.matmul %62, %46, %cst_29 {dimension_numbers = #tpu.dot_dimension_numbers<[1], [0], [0], [1], [0, 0, 1, 1], [], []>} : vector<8x8xbf16>, vector<8x8xbf16>, vector<8x8xf32> -> vector<8x8xf32>
    %64 = vector.extract_strided_slice %41 {offsets = [0, 8], sizes = [8, 8], strides = [1, 1]} : vector<8x32xbf16> to vector<8x8xbf16>
    %65 = vector.extract_strided_slice %42 {offsets = [0, 8], sizes = [8, 8], strides = [1, 1]} : vector<8x32xbf16> to vector<8x8xbf16>
    %66 = vector.extract_strided_slice %43 {offsets = [0, 8], sizes = [8, 8], strides = [1, 1]} : vector<8x32xbf16> to vector<8x8xbf16>
    %cst_30 = arith.constant dense<0.000000e+00> : vector<8x8xf32>
    %67 = tpu.matmul %64, %65, %cst_30 {dimension_numbers = #tpu.dot_dimension_numbers<[1], [1], [0], [0], [0, 0, 1, 0], [], []>} : vector<8x8xbf16>, vector<8x8xbf16>, vector<8x8xf32> -> vector<8x8xf32>
    %cst_31 = arith.constant 0.353553385 : f32
    %68 = vector.broadcast %cst_31 : f32 to vector<8x8xf32>
    %69 = arith.mulf %67, %68 : vector<8x8xf32>
    %70 = vector.extract_strided_slice %38 {offsets = [0, 8], sizes = [8, 8], strides = [1, 1]} : vector<8x32xf32> to vector<8x8xf32>
    %71 = arith.addf %69, %70 : vector<8x8xf32>
    %cst_32 = arith.constant dense<0xFF800000> : vector<8xf32>
    %72 = vector.multi_reduction <maximumf>, %71, %cst_32 [1] : vector<8x8xf32> to vector<8xf32>
    %73 = vector.shape_cast %72 : vector<8xf32> to vector<8x1xf32>
    %74 = vector.broadcast %73 : vector<8x1xf32> to vector<8x8xf32>
    %75 = arith.subf %71, %74 : vector<8x8xf32>
    %76 = math.exp %75 : vector<8x8xf32>
    %cst_33 = arith.constant dense<0.000000e+00> : vector<8xf32>
    %77 = vector.multi_reduction <add>, %76, %cst_33 [1] : vector<8x8xf32> to vector<8xf32>
    %78 = vector.shape_cast %77 : vector<8xf32> to vector<8x1xf32>
    %79 = tpu.reciprocal %78 {approx = true} : vector<8x1xf32> -> vector<8x1xf32>
    %80 = vector.broadcast %79 : vector<8x1xf32> to vector<8x8xf32>
    %81 = arith.mulf %76, %80 : vector<8x8xf32>
    %82 = arith.truncf %81 : vector<8x8xf32> to vector<8x8xbf16>
    %cst_34 = arith.constant dense<0.000000e+00> : vector<8x8xf32>
    %83 = tpu.matmul %82, %66, %cst_34 {dimension_numbers = #tpu.dot_dimension_numbers<[1], [0], [0], [1], [0, 0, 1, 1], [], []>} : vector<8x8xbf16>, vector<8x8xbf16>, vector<8x8xf32> -> vector<8x8xf32>
    %84 = vector.extract_strided_slice %41 {offsets = [0, 16], sizes = [8, 8], strides = [1, 1]} : vector<8x32xbf16> to vector<8x8xbf16>
    %85 = vector.extract_strided_slice %42 {offsets = [0, 16], sizes = [8, 8], strides = [1, 1]} : vector<8x32xbf16> to vector<8x8xbf16>
    %86 = vector.extract_strided_slice %43 {offsets = [0, 16], sizes = [8, 8], strides = [1, 1]} : vector<8x32xbf16> to vector<8x8xbf16>
    %cst_35 = arith.constant dense<0.000000e+00> : vector<8x8xf32>
    %87 = tpu.matmul %84, %85, %cst_35 {dimension_numbers = #tpu.dot_dimension_numbers<[1], [1], [0], [0], [0, 0, 1, 0], [], []>} : vector<8x8xbf16>, vector<8x8xbf16>, vector<8x8xf32> -> vector<8x8xf32>
    %cst_36 = arith.constant 0.353553385 : f32
    %88 = vector.broadcast %cst_36 : f32 to vector<8x8xf32>
    %89 = arith.mulf %87, %88 : vector<8x8xf32>
    %90 = vector.extract_strided_slice %38 {offsets = [0, 16], sizes = [8, 8], strides = [1, 1]} : vector<8x32xf32> to vector<8x8xf32>
    %91 = arith.addf %89, %90 : vector<8x8xf32>
    %cst_37 = arith.constant dense<0xFF800000> : vector<8xf32>
    %92 = vector.multi_reduction <maximumf>, %91, %cst_37 [1] : vector<8x8xf32> to vector<8xf32>
    %93 = vector.shape_cast %92 : vector<8xf32> to vector<8x1xf32>
    %94 = vector.broadcast %93 : vector<8x1xf32> to vector<8x8xf32>
    %95 = arith.subf %91, %94 : vector<8x8xf32>
    %96 = math.exp %95 : vector<8x8xf32>
    %cst_38 = arith.constant dense<0.000000e+00> : vector<8xf32>
    %97 = vector.multi_reduction <add>, %96, %cst_38 [1] : vector<8x8xf32> to vector<8xf32>
    %98 = vector.shape_cast %97 : vector<8xf32> to vector<8x1xf32>
    %99 = tpu.reciprocal %98 {approx = true} : vector<8x1xf32> -> vector<8x1xf32>
    %100 = vector.broadcast %99 : vector<8x1xf32> to vector<8x8xf32>
    %101 = arith.mulf %96, %100 : vector<8x8xf32>
    %102 = arith.truncf %101 : vector<8x8xf32> to vector<8x8xbf16>
    %cst_39 = arith.constant dense<0.000000e+00> : vector<8x8xf32>
    %103 = tpu.matmul %102, %86, %cst_39 {dimension_numbers = #tpu.dot_dimension_numbers<[1], [0], [0], [1], [0, 0, 1, 1], [], []>} : vector<8x8xbf16>, vector<8x8xbf16>, vector<8x8xf32> -> vector<8x8xf32>
    %104 = vector.extract_strided_slice %41 {offsets = [0, 24], sizes = [8, 8], strides = [1, 1]} : vector<8x32xbf16> to vector<8x8xbf16>
    %105 = vector.extract_strided_slice %42 {offsets = [0, 24], sizes = [8, 8], strides = [1, 1]} : vector<8x32xbf16> to vector<8x8xbf16>
    %106 = vector.extract_strided_slice %43 {offsets = [0, 24], sizes = [8, 8], strides = [1, 1]} : vector<8x32xbf16> to vector<8x8xbf16>
    %cst_40 = arith.constant dense<0.000000e+00> : vector<8x8xf32>
    %107 = tpu.matmul %104, %105, %cst_40 {dimension_numbers = #tpu.dot_dimension_numbers<[1], [1], [0], [0], [0, 0, 1, 0], [], []>} : vector<8x8xbf16>, vector<8x8xbf16>, vector<8x8xf32> -> vector<8x8xf32>
    %cst_41 = arith.constant 0.353553385 : f32
    %108 = vector.broadcast %cst_41 : f32 to vector<8x8xf32>
    %109 = arith.mulf %107, %108 : vector<8x8xf32>
    %110 = vector.extract_strided_slice %38 {offsets = [0, 24], sizes = [8, 8], strides = [1, 1]} : vector<8x32xf32> to vector<8x8xf32>
    %111 = arith.addf %109, %110 : vector<8x8xf32>
    %cst_42 = arith.constant dense<0xFF800000> : vector<8xf32>
    %112 = vector.multi_reduction <maximumf>, %111, %cst_42 [1] : vector<8x8xf32> to vector<8xf32>
    %113 = vector.shape_cast %112 : vector<8xf32> to vector<8x1xf32>
    %114 = vector.broadcast %113 : vector<8x1xf32> to vector<8x8xf32>
    %115 = arith.subf %111, %114 : vector<8x8xf32>
    %116 = math.exp %115 : vector<8x8xf32>
    %cst_43 = arith.constant dense<0.000000e+00> : vector<8xf32>
    %117 = vector.multi_reduction <add>, %116, %cst_43 [1] : vector<8x8xf32> to vector<8xf32>
    %118 = vector.shape_cast %117 : vector<8xf32> to vector<8x1xf32>
    %119 = tpu.reciprocal %118 {approx = true} : vector<8x1xf32> -> vector<8x1xf32>
    %120 = vector.broadcast %119 : vector<8x1xf32> to vector<8x8xf32>
    %121 = arith.mulf %116, %120 : vector<8x8xf32>
    %122 = arith.truncf %121 : vector<8x8xf32> to vector<8x8xbf16>
    %cst_44 = arith.constant dense<0.000000e+00> : vector<8x8xf32>
    %123 = tpu.matmul %122, %106, %cst_44 {dimension_numbers = #tpu.dot_dimension_numbers<[1], [0], [0], [1], [0, 0, 1, 1], [], []>} : vector<8x8xbf16>, vector<8x8xbf16>, vector<8x8xf32> -> vector<8x8xf32>
    %124 = tpu.concatenate %63, %83, %103, %123 in 1 : vector<8x8xf32>, vector<8x8xf32>, vector<8x8xf32>, vector<8x8xf32> -> vector<8x32xf32>
    %c1_45 = arith.constant 1 : index
    %c0_46 = arith.constant 0 : index
    %c0_47 = arith.constant 0 : index
    %125 = vector.load %arg2[%c1_45, %c0_46, %c0_47] : memref<2x8x2xf32, #tpu.memory_space<vmem>>, vector<1x8x2xf32>
    %126 = vector.shape_cast %125 : vector<1x8x2xf32> to vector<8x2xf32>
    %c0_48 = arith.constant 0 : index
    %c0_49 = arith.constant 0 : index
    %127 = vector.load %arg7[%c0_48, %c0_49] : memref<2x16xf32, #tpu.memory_space<vmem>>, vector<2x16xf32>
    %cst_50 = arith.constant dense<0.000000e+00> : vector<8x16xf32>
    %128 = tpu.matmul %126, %127, %cst_50 {dimension_numbers = #tpu.dot_dimension_numbers<[1], [0], [0], [1], [0, 0, 1, 1], [], []>} : vector<8x2xf32>, vector<2x16xf32>, vector<8x16xf32> -> vector<8x16xf32>
    %129 = tpu.concatenate %128, %128, %128, %128, %128, %128, %128, %128 in 1 : vector<8x16xf32>, vector<8x16xf32>, vector<8x16xf32>, vector<8x16xf32>, vector<8x16xf32>, vector<8x16xf32>, vector<8x16xf32>, vector<8x16xf32> -> vector<8x128xf32>
    %130 = vector.extract_strided_slice %128 {offsets = [0, 0], sizes = [1, 16], strides = [1, 1]} : vector<8x16xf32> to vector<1x16xf32>
    %131 = vector.extract_strided_slice %128 {offsets = [1, 0], sizes = [1, 16], strides = [1, 1]} : vector<8x16xf32> to vector<1x16xf32>
    %132 = vector.extract_strided_slice %128 {offsets = [2, 0], sizes = [1, 16], strides = [1, 1]} : vector<8x16xf32> to vector<1x16xf32>
    %133 = vector.extract_strided_slice %128 {offsets = [3, 0], sizes = [1, 16], strides = [1, 1]} : vector<8x16xf32> to vector<1x16xf32>
    %134 = vector.extract_strided_slice %128 {offsets = [4, 0], sizes = [1, 16], strides = [1, 1]} : vector<8x16xf32> to vector<1x16xf32>
    %135 = vector.extract_strided_slice %128 {offsets = [5, 0], sizes = [1, 16], strides = [1, 1]} : vector<8x16xf32> to vector<1x16xf32>
    %136 = vector.extract_strided_slice %128 {offsets = [6, 0], sizes = [1, 16], strides = [1, 1]} : vector<8x16xf32> to vector<1x16xf32>
    %137 = vector.extract_strided_slice %128 {offsets = [7, 0], sizes = [1, 16], strides = [1, 1]} : vector<8x16xf32> to vector<1x16xf32>
    %138 = tpu.concatenate %130, %131, %132, %133, %134, %135, %136, %137 in 1 : vector<1x16xf32>, vector<1x16xf32>, vector<1x16xf32>, vector<1x16xf32>, vector<1x16xf32>, vector<1x16xf32>, vector<1x16xf32>, vector<1x16xf32> -> vector<1x128xf32>
    %139 = vector.broadcast %138 : vector<1x128xf32> to vector<8x128xf32>
    %140 = arith.subf %129, %139 : vector<8x128xf32>
    %141 = vector.broadcast %8 : vector<1x128xf32> to vector<8x128xf32>
    %142 = arith.addf %140, %141 : vector<8x128xf32>
    %cst_51 = arith.constant 0.000000e+00 : f32
    %143 = vector.broadcast %cst_51 : f32 to vector<8x128xf32>
    %144 = arith.maximumf %142, %143 : vector<8x128xf32>
    %145 = arith.truncf %144 : vector<8x128xf32> to vector<8x128xbf16>
    %c0_52 = arith.constant 0 : index
    %c0_53 = arith.constant 0 : index
    %146 = vector.load %arg8[%c0_52, %c0_53] : memref<128x32xbf16, #tpu.memory_space<vmem>>, vector<128x32xbf16>
    %cst_54 = arith.constant dense<0.000000e+00> : vector<8x32xf32>
    %147 = tpu.matmul %145, %146, %cst_54 {dimension_numbers = #tpu.dot_dimension_numbers<[1], [0], [0], [1], [0, 0, 1, 1], [], []>} : vector<8x128xbf16>, vector<128x32xbf16>, vector<8x32xf32> -> vector<8x32xf32>
    %148 = vector.broadcast %7 : vector<1x32xf32> to vector<8x32xf32>
    %149 = arith.addf %147, %148 : vector<8x32xf32>
    %150 = vector.extract_strided_slice %13 {offsets = [8, 0], sizes = [8, 96], strides = [1, 1]} : vector<16x96xf32> to vector<8x96xf32>
    %151 = arith.truncf %150 : vector<8x96xf32> to vector<8x96xbf16>
    %152 = vector.extract_strided_slice %151 {offsets = [0, 0], sizes = [8, 32], strides = [1, 1]} : vector<8x96xbf16> to vector<8x32xbf16>
    %153 = vector.extract_strided_slice %151 {offsets = [0, 32], sizes = [8, 32], strides = [1, 1]} : vector<8x96xbf16> to vector<8x32xbf16>
    %154 = vector.extract_strided_slice %151 {offsets = [0, 64], sizes = [8, 32], strides = [1, 1]} : vector<8x96xbf16> to vector<8x32xbf16>
    %155 = vector.extract_strided_slice %152 {offsets = [0, 0], sizes = [8, 8], strides = [1, 1]} : vector<8x32xbf16> to vector<8x8xbf16>
    %156 = vector.extract_strided_slice %153 {offsets = [0, 0], sizes = [8, 8], strides = [1, 1]} : vector<8x32xbf16> to vector<8x8xbf16>
    %157 = vector.extract_strided_slice %154 {offsets = [0, 0], sizes = [8, 8], strides = [1, 1]} : vector<8x32xbf16> to vector<8x8xbf16>
    %cst_55 = arith.constant dense<0.000000e+00> : vector<8x8xf32>
    %158 = tpu.matmul %155, %156, %cst_55 {dimension_numbers = #tpu.dot_dimension_numbers<[1], [1], [0], [0], [0, 0, 1, 0], [], []>} : vector<8x8xbf16>, vector<8x8xbf16>, vector<8x8xf32> -> vector<8x8xf32>
    %cst_56 = arith.constant 0.353553385 : f32
    %159 = vector.broadcast %cst_56 : f32 to vector<8x8xf32>
    %160 = arith.mulf %158, %159 : vector<8x8xf32>
    %161 = vector.extract_strided_slice %149 {offsets = [0, 0], sizes = [8, 8], strides = [1, 1]} : vector<8x32xf32> to vector<8x8xf32>
    %162 = arith.addf %160, %161 : vector<8x8xf32>
    %cst_57 = arith.constant dense<0xFF800000> : vector<8xf32>
    %163 = vector.multi_reduction <maximumf>, %162, %cst_57 [1] : vector<8x8xf32> to vector<8xf32>
    %164 = vector.shape_cast %163 : vector<8xf32> to vector<8x1xf32>
    %165 = vector.broadcast %164 : vector<8x1xf32> to vector<8x8xf32>
    %166 = arith.subf %162, %165 : vector<8x8xf32>
    %167 = math.exp %166 : vector<8x8xf32>
    %cst_58 = arith.constant dense<0.000000e+00> : vector<8xf32>
    %168 = vector.multi_reduction <add>, %167, %cst_58 [1] : vector<8x8xf32> to vector<8xf32>
    %169 = vector.shape_cast %168 : vector<8xf32> to vector<8x1xf32>
    %170 = tpu.reciprocal %169 {approx = true} : vector<8x1xf32> -> vector<8x1xf32>
    %171 = vector.broadcast %170 : vector<8x1xf32> to vector<8x8xf32>
    %172 = arith.mulf %167, %171 : vector<8x8xf32>
    %173 = arith.truncf %172 : vector<8x8xf32> to vector<8x8xbf16>
    %cst_59 = arith.constant dense<0.000000e+00> : vector<8x8xf32>
    %174 = tpu.matmul %173, %157, %cst_59 {dimension_numbers = #tpu.dot_dimension_numbers<[1], [0], [0], [1], [0, 0, 1, 1], [], []>} : vector<8x8xbf16>, vector<8x8xbf16>, vector<8x8xf32> -> vector<8x8xf32>
    %175 = vector.extract_strided_slice %152 {offsets = [0, 8], sizes = [8, 8], strides = [1, 1]} : vector<8x32xbf16> to vector<8x8xbf16>
    %176 = vector.extract_strided_slice %153 {offsets = [0, 8], sizes = [8, 8], strides = [1, 1]} : vector<8x32xbf16> to vector<8x8xbf16>
    %177 = vector.extract_strided_slice %154 {offsets = [0, 8], sizes = [8, 8], strides = [1, 1]} : vector<8x32xbf16> to vector<8x8xbf16>
    %cst_60 = arith.constant dense<0.000000e+00> : vector<8x8xf32>
    %178 = tpu.matmul %175, %176, %cst_60 {dimension_numbers = #tpu.dot_dimension_numbers<[1], [1], [0], [0], [0, 0, 1, 0], [], []>} : vector<8x8xbf16>, vector<8x8xbf16>, vector<8x8xf32> -> vector<8x8xf32>
    %cst_61 = arith.constant 0.353553385 : f32
    %179 = vector.broadcast %cst_61 : f32 to vector<8x8xf32>
    %180 = arith.mulf %178, %179 : vector<8x8xf32>
    %181 = vector.extract_strided_slice %149 {offsets = [0, 8], sizes = [8, 8], strides = [1, 1]} : vector<8x32xf32> to vector<8x8xf32>
    %182 = arith.addf %180, %181 : vector<8x8xf32>
    %cst_62 = arith.constant dense<0xFF800000> : vector<8xf32>
    %183 = vector.multi_reduction <maximumf>, %182, %cst_62 [1] : vector<8x8xf32> to vector<8xf32>
    %184 = vector.shape_cast %183 : vector<8xf32> to vector<8x1xf32>
    %185 = vector.broadcast %184 : vector<8x1xf32> to vector<8x8xf32>
    %186 = arith.subf %182, %185 : vector<8x8xf32>
    %187 = math.exp %186 : vector<8x8xf32>
    %cst_63 = arith.constant dense<0.000000e+00> : vector<8xf32>
    %188 = vector.multi_reduction <add>, %187, %cst_63 [1] : vector<8x8xf32> to vector<8xf32>
    %189 = vector.shape_cast %188 : vector<8xf32> to vector<8x1xf32>
    %190 = tpu.reciprocal %189 {approx = true} : vector<8x1xf32> -> vector<8x1xf32>
    %191 = vector.broadcast %190 : vector<8x1xf32> to vector<8x8xf32>
    %192 = arith.mulf %187, %191 : vector<8x8xf32>
    %193 = arith.truncf %192 : vector<8x8xf32> to vector<8x8xbf16>
    %cst_64 = arith.constant dense<0.000000e+00> : vector<8x8xf32>
    %194 = tpu.matmul %193, %177, %cst_64 {dimension_numbers = #tpu.dot_dimension_numbers<[1], [0], [0], [1], [0, 0, 1, 1], [], []>} : vector<8x8xbf16>, vector<8x8xbf16>, vector<8x8xf32> -> vector<8x8xf32>
    %195 = vector.extract_strided_slice %152 {offsets = [0, 16], sizes = [8, 8], strides = [1, 1]} : vector<8x32xbf16> to vector<8x8xbf16>
    %196 = vector.extract_strided_slice %153 {offsets = [0, 16], sizes = [8, 8], strides = [1, 1]} : vector<8x32xbf16> to vector<8x8xbf16>
    %197 = vector.extract_strided_slice %154 {offsets = [0, 16], sizes = [8, 8], strides = [1, 1]} : vector<8x32xbf16> to vector<8x8xbf16>
    %cst_65 = arith.constant dense<0.000000e+00> : vector<8x8xf32>
    %198 = tpu.matmul %195, %196, %cst_65 {dimension_numbers = #tpu.dot_dimension_numbers<[1], [1], [0], [0], [0, 0, 1, 0], [], []>} : vector<8x8xbf16>, vector<8x8xbf16>, vector<8x8xf32> -> vector<8x8xf32>
    %cst_66 = arith.constant 0.353553385 : f32
    %199 = vector.broadcast %cst_66 : f32 to vector<8x8xf32>
    %200 = arith.mulf %198, %199 : vector<8x8xf32>
    %201 = vector.extract_strided_slice %149 {offsets = [0, 16], sizes = [8, 8], strides = [1, 1]} : vector<8x32xf32> to vector<8x8xf32>
    %202 = arith.addf %200, %201 : vector<8x8xf32>
    %cst_67 = arith.constant dense<0xFF800000> : vector<8xf32>
    %203 = vector.multi_reduction <maximumf>, %202, %cst_67 [1] : vector<8x8xf32> to vector<8xf32>
    %204 = vector.shape_cast %203 : vector<8xf32> to vector<8x1xf32>
    %205 = vector.broadcast %204 : vector<8x1xf32> to vector<8x8xf32>
    %206 = arith.subf %202, %205 : vector<8x8xf32>
    %207 = math.exp %206 : vector<8x8xf32>
    %cst_68 = arith.constant dense<0.000000e+00> : vector<8xf32>
    %208 = vector.multi_reduction <add>, %207, %cst_68 [1] : vector<8x8xf32> to vector<8xf32>
    %209 = vector.shape_cast %208 : vector<8xf32> to vector<8x1xf32>
    %210 = tpu.reciprocal %209 {approx = true} : vector<8x1xf32> -> vector<8x1xf32>
    %211 = vector.broadcast %210 : vector<8x1xf32> to vector<8x8xf32>
    %212 = arith.mulf %207, %211 : vector<8x8xf32>
    %213 = arith.truncf %212 : vector<8x8xf32> to vector<8x8xbf16>
    %cst_69 = arith.constant dense<0.000000e+00> : vector<8x8xf32>
    %214 = tpu.matmul %213, %197, %cst_69 {dimension_numbers = #tpu.dot_dimension_numbers<[1], [0], [0], [1], [0, 0, 1, 1], [], []>} : vector<8x8xbf16>, vector<8x8xbf16>, vector<8x8xf32> -> vector<8x8xf32>
    %215 = vector.extract_strided_slice %152 {offsets = [0, 24], sizes = [8, 8], strides = [1, 1]} : vector<8x32xbf16> to vector<8x8xbf16>
    %216 = vector.extract_strided_slice %153 {offsets = [0, 24], sizes = [8, 8], strides = [1, 1]} : vector<8x32xbf16> to vector<8x8xbf16>
    %217 = vector.extract_strided_slice %154 {offsets = [0, 24], sizes = [8, 8], strides = [1, 1]} : vector<8x32xbf16> to vector<8x8xbf16>
    %cst_70 = arith.constant dense<0.000000e+00> : vector<8x8xf32>
    %218 = tpu.matmul %215, %216, %cst_70 {dimension_numbers = #tpu.dot_dimension_numbers<[1], [1], [0], [0], [0, 0, 1, 0], [], []>} : vector<8x8xbf16>, vector<8x8xbf16>, vector<8x8xf32> -> vector<8x8xf32>
    %cst_71 = arith.constant 0.353553385 : f32
    %219 = vector.broadcast %cst_71 : f32 to vector<8x8xf32>
    %220 = arith.mulf %218, %219 : vector<8x8xf32>
    %221 = vector.extract_strided_slice %149 {offsets = [0, 24], sizes = [8, 8], strides = [1, 1]} : vector<8x32xf32> to vector<8x8xf32>
    %222 = arith.addf %220, %221 : vector<8x8xf32>
    %cst_72 = arith.constant dense<0xFF800000> : vector<8xf32>
    %223 = vector.multi_reduction <maximumf>, %222, %cst_72 [1] : vector<8x8xf32> to vector<8xf32>
    %224 = vector.shape_cast %223 : vector<8xf32> to vector<8x1xf32>
    %225 = vector.broadcast %224 : vector<8x1xf32> to vector<8x8xf32>
    %226 = arith.subf %222, %225 : vector<8x8xf32>
    %227 = math.exp %226 : vector<8x8xf32>
    %cst_73 = arith.constant dense<0.000000e+00> : vector<8xf32>
    %228 = vector.multi_reduction <add>, %227, %cst_73 [1] : vector<8x8xf32> to vector<8xf32>
    %229 = vector.shape_cast %228 : vector<8xf32> to vector<8x1xf32>
    %230 = tpu.reciprocal %229 {approx = true} : vector<8x1xf32> -> vector<8x1xf32>
    %231 = vector.broadcast %230 : vector<8x1xf32> to vector<8x8xf32>
    %232 = arith.mulf %227, %231 : vector<8x8xf32>
    %233 = arith.truncf %232 : vector<8x8xf32> to vector<8x8xbf16>
    %cst_74 = arith.constant dense<0.000000e+00> : vector<8x8xf32>
    %234 = tpu.matmul %233, %217, %cst_74 {dimension_numbers = #tpu.dot_dimension_numbers<[1], [0], [0], [1], [0, 0, 1, 1], [], []>} : vector<8x8xbf16>, vector<8x8xbf16>, vector<8x8xf32> -> vector<8x8xf32>
    %235 = tpu.concatenate %174, %194, %214, %234 in 1 : vector<8x8xf32>, vector<8x8xf32>, vector<8x8xf32>, vector<8x8xf32> -> vector<8x32xf32>
    %236 = tpu.concatenate %124, %235 in 0 : vector<8x32xf32>, vector<8x32xf32> -> vector<16x32xf32>
    %237 = arith.truncf %236 : vector<16x32xf32> to vector<16x32xbf16>
    %c0_75 = arith.constant 0 : index
    %c0_76 = arith.constant 0 : index
    %238 = vector.load %arg4[%c0_75, %c0_76] : memref<32x32xbf16, #tpu.memory_space<vmem>>, vector<32x32xbf16>
    %cst_77 = arith.constant dense<0.000000e+00> : vector<16x32xf32>
    %239 = tpu.matmul %237, %238, %cst_77 {dimension_numbers = #tpu.dot_dimension_numbers<[1], [0], [0], [1], [0, 0, 1, 1], [], []>} : vector<16x32xbf16>, vector<32x32xbf16>, vector<16x32xf32> -> vector<16x32xf32>
    %240 = vector.broadcast %0 : vector<1x32xf32> to vector<16x32xf32>
    %241 = arith.addf %239, %240 : vector<16x32xf32>
    %cst_78 = arith.constant dense<0.000000e+00> : vector<16xf32>
    %242 = vector.multi_reduction <add>, %241, %cst_78 [1] : vector<16x32xf32> to vector<16xf32>
    %243 = vector.shape_cast %242 : vector<16xf32> to vector<16x1xf32>
    %cst_79 = arith.constant 3.200000e+01 : f32
    %244 = vector.broadcast %cst_79 : f32 to vector<16x1xf32>
    %245 = arith.divf %243, %244 : vector<16x1xf32>
    %246 = vector.broadcast %245 : vector<16x1xf32> to vector<16x32xf32>
    %247 = arith.subf %241, %246 : vector<16x32xf32>
    %248 = arith.mulf %247, %247 : vector<16x32xf32>
    %cst_80 = arith.constant dense<0.000000e+00> : vector<16xf32>
    %249 = vector.multi_reduction <add>, %248, %cst_80 [1] : vector<16x32xf32> to vector<16xf32>
    %250 = vector.shape_cast %249 : vector<16xf32> to vector<16x1xf32>
    %cst_81 = arith.constant 3.200000e+01 : f32
    %251 = vector.broadcast %cst_81 : f32 to vector<16x1xf32>
    %252 = arith.divf %250, %251 : vector<16x1xf32>
    %253 = vector.broadcast %245 : vector<16x1xf32> to vector<16x32xf32>
    %254 = arith.subf %241, %253 : vector<16x32xf32>
    %cst_82 = arith.constant 9.99999974E-6 : f32
    %255 = vector.broadcast %cst_82 : f32 to vector<16x1xf32>
    %256 = arith.addf %252, %255 : vector<16x1xf32>
    %257 = math.rsqrt %256 : vector<16x1xf32>
    %258 = vector.broadcast %257 : vector<16x1xf32> to vector<16x32xf32>
    %259 = arith.mulf %254, %258 : vector<16x32xf32>
    %260 = vector.broadcast %3 : vector<1x32xf32> to vector<16x32xf32>
    %261 = arith.mulf %259, %260 : vector<16x32xf32>
    %262 = vector.broadcast %4 : vector<1x32xf32> to vector<16x32xf32>
    %263 = arith.addf %261, %262 : vector<16x32xf32>
    %264 = arith.addf %241, %263 : vector<16x32xf32>
    %265 = arith.truncf %264 : vector<16x32xf32> to vector<16x32xbf16>
    %c0_83 = arith.constant 0 : index
    %c0_84 = arith.constant 0 : index
    %266 = vector.load %arg5[%c0_83, %c0_84] : memref<32x32xbf16, #tpu.memory_space<vmem>>, vector<32x32xbf16>
    %cst_85 = arith.constant dense<0.000000e+00> : vector<16x32xf32>
    %267 = tpu.matmul %265, %266, %cst_85 {dimension_numbers = #tpu.dot_dimension_numbers<[1], [0], [0], [1], [0, 0, 1, 1], [], []>} : vector<16x32xbf16>, vector<32x32xbf16>, vector<16x32xf32> -> vector<16x32xf32>
    %268 = vector.broadcast %1 : vector<1x32xf32> to vector<16x32xf32>
    %269 = arith.addf %267, %268 : vector<16x32xf32>
    %cst_86 = arith.constant 0.000000e+00 : f32
    %270 = vector.broadcast %cst_86 : f32 to vector<16x32xf32>
    %271 = arith.maximumf %269, %270 : vector<16x32xf32>
    %272 = arith.truncf %271 : vector<16x32xf32> to vector<16x32xbf16>
    %c0_87 = arith.constant 0 : index
    %c0_88 = arith.constant 0 : index
    %273 = vector.load %arg6[%c0_87, %c0_88] : memref<32x32xbf16, #tpu.memory_space<vmem>>, vector<32x32xbf16>
    %cst_89 = arith.constant dense<0.000000e+00> : vector<16x32xf32>
    %274 = tpu.matmul %272, %273, %cst_89 {dimension_numbers = #tpu.dot_dimension_numbers<[1], [0], [0], [1], [0, 0, 1, 1], [], []>} : vector<16x32xbf16>, vector<32x32xbf16>, vector<16x32xf32> -> vector<16x32xf32>
    %275 = vector.broadcast %2 : vector<1x32xf32> to vector<16x32xf32>
    %276 = arith.addf %274, %275 : vector<16x32xf32>
    %277 = arith.addf %264, %276 : vector<16x32xf32>
    %cst_90 = arith.constant dense<0.000000e+00> : vector<16xf32>
    %278 = vector.multi_reduction <add>, %277, %cst_90 [1] : vector<16x32xf32> to vector<16xf32>
    %279 = vector.shape_cast %278 : vector<16xf32> to vector<16x1xf32>
    %cst_91 = arith.constant 3.200000e+01 : f32
    %280 = vector.broadcast %cst_91 : f32 to vector<16x1xf32>
    %281 = arith.divf %279, %280 : vector<16x1xf32>
    %282 = vector.broadcast %281 : vector<16x1xf32> to vector<16x32xf32>
    %283 = arith.subf %277, %282 : vector<16x32xf32>
    %284 = arith.mulf %283, %283 : vector<16x32xf32>
    %cst_92 = arith.constant dense<0.000000e+00> : vector<16xf32>
    %285 = vector.multi_reduction <add>, %284, %cst_92 [1] : vector<16x32xf32> to vector<16xf32>
    %286 = vector.shape_cast %285 : vector<16xf32> to vector<16x1xf32>
    %cst_93 = arith.constant 3.200000e+01 : f32
    %287 = vector.broadcast %cst_93 : f32 to vector<16x1xf32>
    %288 = arith.divf %286, %287 : vector<16x1xf32>
    %289 = vector.broadcast %281 : vector<16x1xf32> to vector<16x32xf32>
    %290 = arith.subf %277, %289 : vector<16x32xf32>
    %cst_94 = arith.constant 9.99999974E-6 : f32
    %291 = vector.broadcast %cst_94 : f32 to vector<16x1xf32>
    %292 = arith.addf %288, %291 : vector<16x1xf32>
    %293 = math.rsqrt %292 : vector<16x1xf32>
    %294 = vector.broadcast %293 : vector<16x1xf32> to vector<16x32xf32>
    %295 = arith.mulf %290, %294 : vector<16x32xf32>
    %296 = vector.broadcast %5 : vector<1x32xf32> to vector<16x32xf32>
    %297 = arith.mulf %295, %296 : vector<16x32xf32>
    %298 = vector.broadcast %6 : vector<1x32xf32> to vector<16x32xf32>
    %299 = arith.addf %297, %298 : vector<16x32xf32>
    %c0_95 = arith.constant 0 : index
    %c0_96 = arith.constant 0 : index
    %300 = vector.load %arg11[%c0_95, %c0_96] : memref<16x32xf32, #tpu.memory_space<vmem>>, vector<16x32xf32>
    tpu.vector_store %arg11[%c0_95, %c0_96], %299 {strides = array<i32>} : memref<16x32xf32, #tpu.memory_space<vmem>>, vector<16x32xf32>,
    return
  }
  func.func @transform_0(%arg0: i32) -> (i32, i32, i32) {
    %c0_i32 = arith.constant 0 : i32
    %c0_i32_0 = arith.constant 0 : i32
    %c0_i32_1 = arith.constant 0 : i32
    return %arg0, %c0_i32, %c0_i32_0 : i32, i32, i32
  }
  func.func @transform_1(%arg0: i32) -> (i32, i32, i32) {
    %c0_i32 = arith.constant 0 : i32
    %c0_i32_0 = arith.constant 0 : i32
    %c0_i32_1 = arith.constant 0 : i32
    return %arg0, %c0_i32, %c0_i32_0 : i32, i32, i32
  }
  func.func @transform_2(%arg0: i32) -> (i32, i32) {
    %c0_i32 = arith.constant 0 : i32
    %c0_i32_0 = arith.constant 0 : i32
    %c0_i32_1 = arith.constant 0 : i32
    return %c0_i32, %c0_i32_0 : i32, i32
  }
  func.func @transform_3(%arg0: i32) -> (i32, i32) {
    %c0_i32 = arith.constant 0 : i32
    %c0_i32_0 = arith.constant 0 : i32
    %c0_i32_1 = arith.constant 0 : i32
    return %c0_i32, %c0_i32_0 : i32, i32
  }
  func.func @transform_4(%arg0: i32) -> (i32, i32) {
    %c0_i32 = arith.constant 0 : i32
    %c0_i32_0 = arith.constant 0 : i32
    %c0_i32_1 = arith.constant 0 : i32
    return %c0_i32, %c0_i32_0 : i32, i32
  }
  func.func @transform_5(%arg0: i32) -> (i32, i32) {
    %c0_i32 = arith.constant 0 : i32
    %c0_i32_0 = arith.constant 0 : i32
    %c0_i32_1 = arith.constant 0 : i32
    return %c0_i32, %c0_i32_0 : i32, i32
  }
  func.func @transform_6(%arg0: i32) -> (i32, i32) {
    %c0_i32 = arith.constant 0 : i32
    %c0_i32_0 = arith.constant 0 : i32
    %c0_i32_1 = arith.constant 0 : i32
    return %c0_i32, %c0_i32_0 : i32, i32
  }
  func.func @transform_7(%arg0: i32) -> (i32, i32) {
    %c0_i32 = arith.constant 0 : i32
    %c0_i32_0 = arith.constant 0 : i32
    %c0_i32_1 = arith.constant 0 : i32
    return %c0_i32, %c0_i32_0 : i32, i32
  }
  func.func @transform_8(%arg0: i32) -> (i32, i32) {
    %c0_i32 = arith.constant 0 : i32
    %c0_i32_0 = arith.constant 0 : i32
    %c0_i32_1 = arith.constant 0 : i32
    return %c0_i32, %c0_i32_0 : i32, i32
  }
  func.func @transform_9(%arg0: i32) -> (i32, i32) {
    %c0_i32 = arith.constant 0 : i32
    %c0_i32_0 = arith.constant 0 : i32
    %c0_i32_1 = arith.constant 0 : i32
    return %c0_i32, %c0_i32_0 : i32, i32
  }
  func.func @transform_10(%arg0: i32) -> (i32, i32) {
    %c0_i32 = arith.constant 0 : i32
    %c0_i32_0 = arith.constant 0 : i32
    return %arg0, %c0_i32 : i32, i32
  }
}

</mosaic_0001>

<bundles_post_ra>
// kernel: tpu_custom_call.1
= control target key start
LH: loop header
LB: loop body
LE: loop exit
PB: predicated region body
PF: predicated region fallthrough
CT: control target
= control target key end

     0   :  { %vm89_vm0 = vcmask 1041408   ;;  %vm85_vm1 = vcmask 15360   ;;  %s1827_s0 = inlined_call_operand.vmem [shape: f32[2,8,32], index: 0, kind: input, shape index: {}]   ;;  %s1828_s1 = inlined_call_operand.vmem [shape: f32[2,8,2], index: 1, kind: input, shape index: {}]   ;;  %s1829_s2 = inlined_call_operand.vmem [shape: bf16[32,96], index: 2, kind: input, shape index: {}]   ;;  %s1830_s3 = inlined_call_operand.vmem [shape: bf16[32,32], index: 3, kind: input, shape index: {}]   ;;  %s1831_s4 = inlined_call_operand.vmem [shape: bf16[32,32], index: 4, kind: input, shape index: {}]   ;;  %s1832_s5 = inlined_call_operand.vmem [shape: bf16[32,32], index: 5, kind: input, shape index: {}]   ;;  %s1833_s6 = inlined_call_operand.vmem [shape: f32[2,16], index: 6, kind: input, shape index: {}]   ;;  %s1834_s7 = inlined_call_operand.vmem [shape: bf16[128,32], index: 7, kind: input, shape index: {}]   ;;  %s1835_s8 = inlined_call_operand.vmem [shape: f32[1,128], index: 8, kind: input, shape index: {}]   ;;  %s1836_s9 = inlined_call_operand.vmem [shape: f32[8,32], index: 9, kind: input, shape index: {}]   ;;  %s1837_s10 = inlined_call_operand.hbm [shape: f32[16,32], index: 10, kind: output, shape index: {}]  }
   0x1   :  { %v1426_v0 = vld [vmem:[%s1833_s6] sm:$0x3]  ;;  %v1225_v2 = vld [vmem:[%s1829_s2 + $0x8] sm:$0xff] }
   0x2   :  { %v83_v1 = vld [vmem:[%s1828_s1] sm:$0xff]  ;;  %1144 = vmatpush.msk.msra.mxu1 %vm89_vm0, %v1426_v0  ;;  %75 = vmatpush.bf16.msra.mxu2 %v1225_v2  ;;  %v47_v5 = vld [vmem:[%s1827_s0 + $0x8] sm:$0xff] }
   0x3   :  { %v1224_v3 = vld [vmem:[%s1829_s2] sm:$0xff]  ;;  %1145 = vmatmul.msk.f32.vlgmr.msra.gmra.mxu1 %vm85_vm1, %v83_v1 }
   0x4   :  { %v46_v4 = vld [vmem:[%s1827_s0] sm:$0xff] }
   0x5   :  { %v48_v6 = vpack.c.bf16 %v47_v5, %v46_v4 }
   0x6   :  { %15 = vsyncpa [#allocation3], 0  ;;  %76 = vmatpush.bf16.msra.mxu2 %v1224_v3  ;;  %vm65_vm2 = vcmask 261120   ;;  %s1350_s2 = smov 48   ;;  %s1351_s24 = smov 32   ;;  %v1494_v20 = vld [vmem:[%s1834_s7 + $0x38] sm:$0xff] }
   0x7   :  { %s1352_s25 = smov 16   ;;  %s1353_s0 = smov 64   ;;  %v1500_v21 = vld [vmem:[%s1834_s7 + $0x30] sm:$0xff]  ;;  %v1506_v23 = vld [vmem:[%s1834_s7 + $0x28] sm:$0xff]  ;;  %v1512_v24 = vld [vmem:[%s1834_s7 + $0x20] sm:$0xff]  ;;  %vm275_vm3 = vcmask 64512  }
   0x8   :  { %s1354_s26 = smov 80   ;;  %s1355_s27 = smov 112   ;;  %v1518_v26 = vld [vmem:[%s1834_s7 + $0x18] sm:$0xff]  ;;  %v1524_v27 = vld [vmem:[%s1834_s7 + $0x10] sm:$0xff]  ;;  %v1530_v31 = vld [vmem:[%s1834_s7 + $0x8] sm:$0xff]  ;;  %vm135_vm4 = vcmask 130048  }
   0x9   :  { %1143 = vmatmul.msk.bf16.vlgmr.msra.gmra.mxu2 %vm65_vm2, %v48_v6  ;;  %s1356_s28 = smov 96   ;;  %s1357_s29 = smov 88   ;;  %v1536_v32 = vld [vmem:[%s1834_s7] sm:$0xff]  ;;  %vm138_vm5 = vcmask 392192   ;;  %vm140_vm6 = vcmask 523264   ;;  %vm144_vm7 = vcmask 785408  }
   0xa   :  { %s1358_s30 = smov 120   ;;  %256 = vmatpush.bf16.msrb.mxu2 %v1494_v20  ;;  %vm142_vm8 = vcmask 654336   ;;  %vm146_vm9 = vcmask 916480   ;;  %v1561_v57 = vld [vmem:[%s1835_s8] ss:$0 sm:$0xff]  ;;  %vm314_vm10 = vcmask 1043456  }
   0xb   :  { %s1359_s17 = smov 56   ;;  %s1361_s18 = smov 72   ;;  %vm529_vm11 = vcmask 195584  }
   0xe   :  { %257 = vmatpush.bf16.msrb.mxu2 %v1500_v21 }
  0x12   :  { %258 = vmatpush.bf16.msrb.mxu2 %v1506_v23 }
  0x16   :  { %259 = vmatpush.bf16.msrb.mxu2 %v1512_v24 }
  0x1a   :  { %260 = vmatpush.bf16.msrb.mxu2 %v1518_v26 }
  0x1e   :  { %261 = vmatpush.bf16.msrb.mxu2 %v1524_v27 }
  0x22   :  { %262 = vmatpush.bf16.msrb.mxu2 %v1530_v31 }
  0x26   :  { %263 = vmatpush.bf16.msrb.mxu2 %v1536_v32 }
  0x2a   :  { %1187 = vmatpush.msk.msra.mxu2 %vm89_vm0, %v1426_v0 }
  0x80   :  { %v1447_v7 = vpop.f32.mrf.mxu1 }
  0x81   :  { %120 = vrot.lane.b32.xlu0 %v1447_v7, %s1350_s2  ;;  %117 = vrot.lane.b32.xlu2 %v1447_v7, %s1351_s24  ;;  %v148_v8 = vrot.slane %v1447_v7, 1  ;;  %v160_v9 = vrot.slane %v1447_v7, 4  ;;  %v152_v10 = vrot.slane %v1447_v7, 2  ;;  %v156_v11 = vrot.slane %v1447_v7, 3 }
  0x82   :  { %114 = vrot.lane.b32.xlu1 %v1447_v7, %s1352_s25  ;;  %v172_v14 = vrot.slane %v1447_v7, 7  ;;  %v168_v15 = vrot.slane %v1447_v7, 6  ;;  %v164_v16 = vrot.slane %v1447_v7, 5 }
  0x89   :  { %123 = vrot.lane.b32.xlu2 %v1447_v7, %s1353_s0  ;;  %149 = vrot.lane.b32.xlu0 %v148_v8, %s1352_s25 }
  0x8a   :  { %126 = vrot.lane.b32.xlu1 %v1447_v7, %s1354_s26 }
  0x8c   :  { %v78_v12 = vpop.f32.mrf.mxu2 }
  0x8d   :  { %v269_v13 = vpack.c.bf16 %v78_v12, %v78_v12 }
  0x8f   :  { %v271_v17 = vunpack.c.l.b16 %v269_v13 }
  0x91   :  { %161 = vrot.lane.b32.xlu2 %v160_v9, %s1353_s0  ;;  %153 = vrot.lane.b32.xlu0 %v152_v10, %s1351_s24  ;;  %v1473_v18 = vpack.c.b16 %v271_v17, %v271_v17  ;;  %v1574_v9 = vld [vmem:[%s1836_s9 + $0x7] ss:$0 sm:$0xff] }
  0x92   :  { %157 = vrot.lane.b32.xlu1 %v156_v11, %s1350_s2 }
  0x94   :  { %v1569_v8 = vpop.f32.mrf.mxu2 }
  0x99   :  { %173 = vrot.lane.b32.xlu2 %v172_v14, %s1355_s27  ;;  %169 = vrot.lane.b32.xlu0 %v168_v15, %s1356_s28 }
  0x9a   :  { %165 = vrot.lane.b32.xlu1 %v164_v16, %s1354_s26 }
  0xa1   :  { %129 = vrot.lane.b32.xlu0 %v1447_v7, %s1356_s28  ;;  %273 = vrot.lane.b32.xlu2 %v1473_v18, %s1356_s28 }
  0xa2   :  { %132 = vrot.lane.b32.xlu1 %v1447_v7, %s1355_s27 }
  0xaa   :  { %333 = vrot.lane.b32.xlu1 %v1473_v18, %s1357_s29 }
  0xb2   :  { %331 = vrot.lane.b32.xlu1 %v1473_v18, %s1358_s30 }
  0xba   :  { %309 = vrot.lane.b32.xlu1 %v1473_v18, %s1353_s0 }
  0xc2   :  { %395 = vrot.lane.b32.xlu1 %v1473_v18, %s1354_s26 }
  0xca   :  { %393 = vrot.lane.b32.xlu1 %v1473_v18, %s1355_s27 }
  0xdb   :  { %v118_v19 = vpop.permute.xlu2 %117 }
  0xe3   :  { %v124_v22 = vpop.permute.xlu2 %123 }
  0xeb   :  { %v162_v25 = vpop.permute.xlu2 %161 }
  0xf3   :  { %v121_v28 = vpop.permute.xlu0 %120  ;;  %v174_v29 = vpop.permute.xlu2 %173 }
  0xf4   :  { %v115_v30 = vpop.permute.xlu1 %114 }
  0xf5   :  { %v136_v41 = vsel %vm135_vm4, %v1447_v7, %v115_v30 }
  0xf6   :  { %v137_v44 = vsel %vm65_vm2, %v136_v41, %v118_v19  ;;  %v1186_v19 = vld [vmem:[%s1828_s1 + $0x8] sm:$0xff]  ;;  %s1360_s1 = smov 104  }
  0xf7   :  { %v139_v49 = vsel %vm138_vm5, %v137_v44, %v121_v28 }
  0xf8   :  { %v141_v51 = vsel %vm140_vm6, %v139_v49, %v124_v22 }
  0xfb   :  { %v150_v33 = vpop.permute.xlu0 %149  ;;  %v274_v34 = vpop.permute.xlu2 %273 }
  0xfc   :  { %v127_v35 = vpop.permute.xlu1 %126  ;;  %v280_v36 = vsel %vm275_vm3, %v274_v34, 0  ;;  %v176_v39 = vsel %vm135_vm4, %v1447_v7, %v150_v33 }
  0xfd   :  { %289 = vmatpush.bf16.xpose.msra.mxu3 %v280_v36  ;;  %v143_v52 = vsel %vm142_vm8, %v141_v51, %v127_v35 }
 0x103   :  { %v154_v37 = vpop.permute.xlu0 %153 }
 0x104   :  { %v158_v38 = vpop.permute.xlu1 %157  ;;  %1178 = vmatmul.msk.bf16.vlgmr.msra.gmra.mxu3 %vm275_vm3, %v269_v13  ;;  %v177_v40 = vsel %vm65_vm2, %v176_v39, %v154_v37 }
 0x105   :  { %v178_v42 = vsel %vm138_vm5, %v177_v40, %v158_v38 }
 0x106   :  { %v179_v46 = vsel %vm140_vm6, %v178_v42, %v162_v25 }
 0x10b   :  { %v170_v43 = vpop.permute.xlu0 %169 }
 0x10c   :  { %v166_v45 = vpop.permute.xlu1 %165 }
 0x10d   :  { %v180_v47 = vsel %vm142_vm8, %v179_v46, %v166_v45 }
 0x10e   :  { %v181_v48 = vsel %vm144_vm7, %v180_v47, %v170_v43 }
 0x10f   :  { %v182_v50 = vsel %vm146_vm9, %v181_v48, %v174_v29 }
 0x110   :  { %v183_v54 = vperm.slane %v182_v50, 0 }
 0x113   :  { %v130_v53 = vpop.permute.xlu0 %129 }
 0x114   :  { %v133_v55 = vpop.permute.xlu1 %132  ;;  %v145_v56 = vsel %vm144_vm7, %v143_v52, %v130_v53 }
 0x115   :  { %v147_v58 = vsel %vm146_vm9, %v145_v56, %v133_v55 }
 0x116   :  { %v184_v59 = vsub.f32 %v147_v58, %v183_v54 }
 0x118   :  { %v188_v60 = vadd.f32 %v1561_v57, %v184_v59  ;;  %v638_v59 = vpack.c.bf16 %v1569_v8, %v1569_v8 }
 0x11a   :  { %v189_v61 = vmax.f32 %v188_v60, 0.0  ;;  %v640_v60 = vunpack.c.l.b16 %v638_v59 }
 0x11c   :  { %v334_v62 = vpop.permute.xlu1 %333  ;;  %v190_v63 = vpack.c.bf16 %v189_v61, %v189_v61 }
 0x11d   :  { %v339_v0 = vsel %vm275_vm3, %v334_v62, 0 }
 0x11e   :  { %264 = vmatmul.bf16.vlgmr.msrb.gmra.mxu2 %v190_v63  ;;  %348 = vmatpush.bf16.xpose.msra.mxu0 %v339_v0 }
 0x124   :  { %v332_v1 = vpop.permute.xlu1 %331 }
 0x125   :  { %1180 = vmatmul.msk.bf16.vlgmr.msra.gmra.mxu0 %vm275_vm3, %v332_v1 }
 0x12c   :  { %v310_v2 = vpop.permute.xlu1 %309 }
 0x12d   :  { %v316_v3 = vsel %vm314_vm10, %v310_v2, 0 }
 0x12e   :  { %325 = vmatpush.bf16.msrb.mxu1 %v316_v3  ;;  %1188 = vmatmul.msk.f32.vlgmr.msra.gmra.mxu2 %vm85_vm1, %v1186_v19 }
 0x134   :  { %v396_v4 = vpop.permute.xlu1 %395 }
 0x135   :  { %v401_v5 = vsel %vm275_vm3, %v396_v4, 0 }
 0x136   :  { %410 = vmatpush.bf16.xpose.msra.mxu1 %v401_v5 }
 0x13c   :  { %v394_v22 = vpop.permute.xlu1 %393 }
 0x187   :  { %v291_v6 = vpop.f32.mrf.mxu3 }
 0x188   :  { %v295_v11 = vmul.f32 0.35355338, %v291_v6 }
 0x18f   :  { %v293_v7 = vpop.f32.mrf.mxu3 }
 0x1a1   :  { %v265_v10 = vpop.f32.mrf.mxu2 }
 0x1a2   :  { %v1577_v12 = vadd.f32 %v1574_v9, %v265_v10  ;;  %v350_v13 = vpop.f32.mrf.mxu0 }
 0x1a3   :  { %v354_v25 = vmul.f32 0.35355338, %v350_v13 }
 0x1a4   :  { %356 = vrot.lane.b32.xlu1 %v1577_v12, %s1358_s30  ;;  %v296_v14 = vadd.f32 %v295_v11, %v1577_v12 }
 0x1a6   :  { %v297_v15 = vsel %vm275_vm3, %v296_v14, -inf }
 0x1a7   :  { %298 = vmax.xlane.f32.xlu0 %v297_v15 }
 0x1a9   :  { %v267_v16 = vpop.f32.mrf.mxu2 }
 0x1aa   :  { %v352_v17 = vpop.f32.mrf.mxu0 }
 0x1b1   :  { %v1599_v38 = vpop.f32.mrf.mxu2 }
 0x1b2   :  { %v589_v53 = vrot.slane %v1599_v38, 2  ;;  %v593_v58 = vrot.slane %v1599_v38, 3  ;;  %v605_v6 = vrot.slane %v1599_v38, 6  ;;  %v585_v8 = vrot.slane %v1599_v38, 1 }
 0x1b3   :  { %v597_v10 = vrot.slane %v1599_v38, 4  ;;  %v609_v11 = vrot.slane %v1599_v38, 7 }
 0x216   :  { %v357_v28 = vpop.permute.xlu1 %356 }
 0x217   :  { %v359_v29 = vadd.f32 %v357_v28, %v354_v25 }
 0x219   :  { %v360_v30 = vsel %vm275_vm3, %v359_v29, -inf }
 0x21a   :  { %361 = vmax.xlane.f32.xlu0 %v360_v30  ;;  %v299_v33 = vpop.xlane.xlu0 %298 }
 0x21b   :  { %v300_v34 = vsub.f32 %v296_v14, %v299_v33 }
 0x21d   :  { %v301_v35 = vmul.f32 1.442695, %v300_v34 }
 0x21f   :  { %1282 = vpow2.f32 %v301_v35 }
 0x225   :  { %v1283_v36 = vpop.eup %1282 }
 0x226   :  { %v303_v37 = vsel %vm275_vm3, %v1283_v36, 0.0 }
 0x227   :  { %304 = vadd.xlane.f32.xlu2 %v303_v37 }
 0x22e   :  { %372 = vrot.lane.b32.xlu0 %v1473_v18, %s1359_s17 }
 0x236   :  { %454 = vrot.lane.b32.xlu0 %v1473_v18, %s1360_s1 }
 0x23e   :  { %433 = vrot.lane.b32.xlu0 %v1473_v18, %s1350_s2 }
 0x23f   :  { %417 = vrot.lane.b32.xlu2 %v1577_v12, %s1355_s27 }
 0x247   :  { %456 = vrot.lane.b32.xlu2 %v1473_v18, %s1361_s18 }
 0x24f   :  { %560 = vrot.lane.b32.xlu2 %v1599_v38, %s1351_s24 }
 0x257   :  { %569 = vrot.lane.b32.xlu2 %v1599_v38, %s1354_s26 }
 0x28d   :  { %v362_v39 = vpop.xlane.xlu0 %361 }
 0x28e   :  { %v363_v40 = vsub.f32 %v359_v29, %v362_v39 }
 0x290   :  { %v364_v41 = vmul.f32 1.442695, %v363_v40 }
 0x292   :  { %1284 = vpow2.f32 %v364_v41 }
 0x298   :  { %v1285_v42 = vpop.eup %1284 }
 0x299   :  { %v366_v43 = vsel %vm275_vm3, %v1285_v42, 0.0 }
 0x29a   :  { %v305_v44 = vpop.xlane.xlu2 %304  ;;  %367 = vadd.xlane.f32.xlu0 %v366_v43 }
 0x29b   :  { %1286 = vrcp.f32 %v305_v44 }
 0x2a0   :  { %v373_v45 = vpop.permute.xlu0 %372 }
 0x2a1   :  { %v1287_v46 = vpop.eup %1286  ;;  %v378_v47 = vsel %vm314_vm10, %v373_v45, 0 }
 0x2a2   :  { %v307_v48 = vmul.f32 %v1287_v46, %v1283_v36  ;;  %v418_v49 = vpop.permute.xlu2 %417  ;;  %387 = vmatpush.bf16.msrb.mxu3 %v378_v47 }
 0x2a4   :  { %v308_v50 = vpack.c.bf16 %v307_v48, %v307_v48 }
 0x2a6   :  { %1179 = vmatmul.msk.bf16.vlgmr.msrb.gmra.mxu1 %vm275_vm3, %v308_v50 }
 0x2a8   :  { %v455_v51 = vpop.permute.xlu0 %454 }
 0x2aa   :  { %v457_v52 = vpop.permute.xlu2 %456 }
 0x2ab   :  { %v462_v54 = vsel %vm275_vm3, %v457_v52, 0 }
 0x2ac   :  { %471 = vmatpush.bf16.xpose.msra.mxu3 %v462_v54 }
 0x2ae   :  { %590 = vrot.lane.b32.xlu0 %v589_v53, %s1351_s24  ;;  %s1362_s24 = smov 40  }
 0x2b0   :  { %v434_v55 = vpop.permute.xlu0 %433 }
 0x2b1   :  { %v439_v56 = vsel %vm314_vm10, %v434_v55, 0 }
 0x2b2   :  { %448 = vmatpush.bf16.msrb.mxu0 %v439_v56  ;;  %v561_v40 = vpop.permute.xlu2 %560 }
 0x2b6   :  { %625 = vmatpush.bf16.msra.mxu0 %v1494_v20  ;;  %1182 = vmatmul.msk.bf16.vlgmr.msra.gmra.mxu1 %vm275_vm3, %v394_v22  ;;  %v1624_v20 = vpack.c.b16 %v640_v60, %v640_v60 }
 0x2b7   :  { %557 = vrot.lane.b32.xlu0 %v1599_v38, %s1352_s25 }
 0x2ba   :  { %626 = vmatpush.bf16.msra.mxu0 %v1500_v21  ;;  %v570_v55 = vpop.permute.xlu2 %569 }
 0x2be   :  { %627 = vmatpush.bf16.msra.mxu0 %v1506_v23 }
 0x2bf   :  { %594 = vrot.lane.b32.xlu0 %v593_v58, %s1350_s2 }
 0x2c2   :  { %628 = vmatpush.bf16.msra.mxu0 %v1512_v24 }
 0x2c6   :  { %629 = vmatpush.bf16.msra.mxu0 %v1518_v26 }
 0x2c7   :  { %642 = vrot.lane.b32.xlu0 %v1624_v20, %s1356_s28 }
 0x2ca   :  { %630 = vmatpush.bf16.msra.mxu0 %v1524_v27  ;;  %v601_v27 = vrot.slane %v1599_v38, 5 }
 0x2ce   :  { %631 = vmatpush.bf16.msra.mxu0 %v1530_v31 }
 0x2cf   :  { %602 = vrot.lane.b32.xlu0 %v601_v27, %s1354_s26 }
 0x2d2   :  { %632 = vmatpush.bf16.msra.mxu0 %v1536_v32 }
 0x2d7   :  { %606 = vrot.lane.b32.xlu0 %v605_v6, %s1356_s28 }
 0x2df   :  { %572 = vrot.lane.b32.xlu0 %v1599_v38, %s1356_s28  ;;  %s1123_s28 = sshll.u32 %s1837_s10, 4  ;;  %s1124_s28 = int_to_ptr.hbm [resolvable:$true] %s1123_s28 }
 0x30d   :  { %v368_v21 = vpop.xlane.xlu0 %367 }
 0x30e   :  { %1288 = vrcp.f32 %v368_v21 }
 0x314   :  { %v1289_v23 = vpop.eup %1288 }
 0x315   :  { %v370_v61 = vmul.f32 %v1289_v23, %v1285_v42 }
 0x317   :  { %v371_v62 = vpack.c.bf16 %v370_v61, %v370_v61 }
 0x319   :  { %1181 = vmatmul.msk.bf16.vlgmr.msrb.gmra.mxu3 %vm275_vm3, %v371_v62 }
 0x320   :  { %v591_v24 = vpop.permute.xlu0 %590 }
 0x323   :  { %v1632_v26 = vpop.f32.mrf.mxu1 }
 0x329   :  { %v558_v63 = vpop.permute.xlu0 %557  ;;  %1184 = vmatmul.msk.bf16.vlgmr.msra.gmra.mxu3 %vm275_vm3, %v455_v51 }
 0x32a   :  { %v578_v39 = vsel %vm135_vm4, %v1599_v38, %v558_v63 }
 0x32b   :  { %v329_v0 = vpop.f32.mrf.mxu1  ;;  %v579_v41 = vsel %vm65_vm2, %v578_v39, %v561_v40 }
 0x331   :  { %v595_v1 = vpop.permute.xlu0 %594 }
 0x333   :  { %v412_v31 = vpop.f32.mrf.mxu1 }
 0x334   :  { %v416_v2 = vmul.f32 0.35355338, %v412_v31 }
 0x336   :  { %v420_v32 = vadd.f32 %v418_v49, %v416_v2 }
 0x338   :  { %v421_v4 = vsel %vm275_vm3, %v420_v32, -inf }
 0x339   :  { %v643_v3 = vpop.permute.xlu0 %642  ;;  %422 = vmax.xlane.f32.xlu1 %v421_v4 }
 0x33a   :  { %v648_v5 = vsel %vm275_vm3, %v643_v3, 0 }
 0x33b   :  { %657 = vmatpush.bf16.xpose.msrb.mxu2 %v648_v5  ;;  %v414_v7 = vpop.f32.mrf.mxu1 }
 0x341   :  { %v603_v44 = vpop.permute.xlu0 %602 }
 0x342   :  { %1189 = vmatmul.msk.bf16.vlgmr.msrb.gmra.mxu2 %vm275_vm3, %v638_v59 }
 0x349   :  { %v607_v48 = vpop.permute.xlu0 %606 }
 0x351   :  { %v573_v59 = vpop.permute.xlu0 %572 }
 0x352   :  { %586 = vrot.lane.b32.xlu1 %v585_v8, %s1352_s25 }
 0x35a   :  { %598 = vrot.lane.b32.xlu1 %v597_v10, %s1353_s0 }
 0x362   :  { %563 = vrot.lane.b32.xlu1 %v1599_v38, %s1350_s2 }
 0x36a   :  { %566 = vrot.lane.b32.xlu1 %v1599_v38, %s1353_s0 }
 0x372   :  { %610 = vrot.lane.b32.xlu1 %v609_v11, %s1355_s27 }
 0x37a   :  { %478 = vrot.lane.b32.xlu1 %v1577_v12, %s1360_s1 }
 0x382   :  { %700 = vrot.lane.b32.xlu1 %v1624_v20, %s1357_s29 }
 0x39c   :  { %v1658_v13 = vpop.f32.mrf.mxu3 }
 0x3a4   :  { %v391_v14 = vpop.f32.mrf.mxu3 }
 0x3ac   :  { %v423_v15 = vpop.xlane.xlu1 %422  ;;  %v473_v16 = vpop.f32.mrf.mxu3 }
 0x3ad   :  { %v424_v17 = vsub.f32 %v420_v32, %v423_v15  ;;  %v477_v52 = vmul.f32 0.35355338, %v473_v16 }
 0x3af   :  { %v425_v19 = vmul.f32 1.442695, %v424_v17 }
 0x3b1   :  { %1290 = vpow2.f32 %v425_v19 }
 0x3b4   :  { %v475_v22 = vpop.f32.mrf.mxu3 }
 0x3b7   :  { %v1291_v25 = vpop.eup %1290 }
 0x3b8   :  { %v427_v28 = vsel %vm275_vm3, %v1291_v25, 0.0 }
 0x3b9   :  { %428 = vadd.xlane.f32.xlu2 %v427_v28 }
 0x3c4   :  { %v587_v29 = vpop.permute.xlu1 %586 }
 0x3c5   :  { %v1661_v30 = vpop.f32.mrf.mxu2  ;;  %v613_v12 = vsel %vm135_vm4, %v1599_v38, %v587_v29 }
 0x3c6   :  { %v614_v33 = vsel %vm65_vm2, %v613_v12, %v591_v24  ;;  %v663_v14 = vmul.f32 0.35355338, %v1661_v30 }
 0x3c7   :  { %v615_v35 = vsel %vm138_vm5, %v614_v33, %v595_v1 }
 0x3cc   :  { %v599_v34 = vpop.permute.xlu1 %598 }
 0x3cd   :  { %v661_v36 = vpop.f32.mrf.mxu2  ;;  %v616_v37 = vsel %vm140_vm6, %v615_v35, %v599_v34 }
 0x3ce   :  { %v617_v47 = vsel %vm142_vm8, %v616_v37, %v603_v44 }
 0x3cf   :  { %v618_v49 = vsel %vm144_vm7, %v617_v47, %v607_v48 }
 0x3d1   :  { %575 = vrot.lane.b32.xlu2 %v1599_v38, %s1355_s27 }
 0x3d4   :  { %v564_v42 = vpop.permute.xlu1 %563 }
 0x3d5   :  { %v580_v43 = vsel %vm138_vm5, %v579_v41, %v564_v42 }
 0x3dc   :  { %v567_v45 = vpop.permute.xlu1 %566 }
 0x3dd   :  { %v581_v46 = vsel %vm140_vm6, %v580_v43, %v567_v45 }
 0x3de   :  { %v582_v58 = vsel %vm142_vm8, %v581_v46, %v570_v55 }
 0x3df   :  { %v583_v21 = vsel %vm144_vm7, %v582_v58, %v573_v59 }
 0x3e4   :  { %v611_v50 = vpop.permute.xlu1 %610 }
 0x3e5   :  { %v619_v51 = vsel %vm146_vm9, %v618_v49, %v611_v50 }
 0x3e6   :  { %v620_v23 = vperm.slane %v619_v51, 0 }
 0x3ec   :  { %v479_v53 = vpop.permute.xlu1 %478 }
 0x3ed   :  { %v481_v38 = vadd.f32 %v479_v53, %v477_v52 }
 0x3ef   :  { %v482_v54 = vsel %vm275_vm3, %v481_v38, -inf }
 0x3f0   :  { %483 = vmax.xlane.f32.xlu0 %v482_v54 }
 0x3f4   :  { %v701_v5 = vpop.permute.xlu1 %700 }
 0x3f5   :  { %v706_v8 = vsel %vm275_vm3, %v701_v5, 0 }
 0x404   :  { %494 = vrot.lane.b32.xlu0 %v1473_v18, %s1362_s24 }
 0x40c   :  { %698 = vrot.lane.b32.xlu0 %v1624_v20, %s1358_s30 }
 0x414   :  { %762 = vrot.lane.b32.xlu0 %v1624_v20, %s1354_s26 }
 0x41c   :  { %821 = vrot.lane.b32.xlu0 %v1624_v20, %s1360_s1 }
 0x42c   :  { %v429_v56 = vpop.xlane.xlu2 %428 }
 0x42d   :  { %1292 = vrcp.f32 %v429_v56 }
 0x433   :  { %v1293_v60 = vpop.eup %1292 }
 0x434   :  { %v431_v18 = vmul.f32 %v1293_v60, %v1291_v25  ;;  %v576_v61 = vpop.permute.xlu2 %575 }
 0x435   :  { %v584_v62 = vsel %vm146_vm9, %v583_v21, %v576_v61 }
 0x436   :  { %v621_v24 = vsub.f32 %v584_v62, %v620_v23  ;;  %v432_v63 = vpack.c.bf16 %v431_v18, %v431_v18 }
 0x438   :  { %1183 = vmatmul.msk.bf16.vlgmr.msrb.gmra.mxu0 %vm275_vm3, %v432_v63  ;;  %v622_v0 = vadd.f32 %v1561_v57, %v621_v24 }
 0x43a   :  { %v623_v1 = vmax.f32 %v622_v0, 0.0 }
 0x43c   :  { %v624_v27 = vpack.c.bf16 %v623_v1, %v623_v1 }
 0x448   :  { %633 = vmatmul.bf16.vlgmr.msra.gmra.mxu0 %v624_v27 }
 0x463   :  { %v484_v31 = vpop.xlane.xlu0 %483 }
 0x464   :  { %v485_v2 = vsub.f32 %v481_v38, %v484_v31 }
 0x466   :  { %v486_v32 = vmul.f32 1.442695, %v485_v2 }
 0x468   :  { %1294 = vpow2.f32 %v486_v32 }
 0x46e   :  { %v1295_v3 = vpop.eup %1294 }
 0x46f   :  { %v488_v4 = vsel %vm275_vm3, %v1295_v3, 0.0 }
 0x470   :  { %489 = vadd.xlane.f32.xlu1 %v488_v4 }
 0x476   :  { %v495_v6 = vpop.permute.xlu0 %494 }
 0x477   :  { %v500_v7 = vsel %vm314_vm10, %v495_v6, 0 }
 0x478   :  { %509 = vmatpush.bf16.msrb.mxu1 %v500_v7 }
 0x47c   :  { %715 = vmatpush.bf16.xpose.msra.mxu1 %v706_v8 }
 0x47e   :  { %v699_v30 = vpop.permute.xlu0 %698 }
 0x489   :  { %823 = vrot.lane.b32.xlu1 %v1624_v20, %s1361_s18 }
 0x4b5   :  { %v1697_v57 = vpop.f32.mrf.mxu0 }
 0x4bd   :  { %v452_v10 = vpop.f32.mrf.mxu0 }
 0x4c5   :  { %v634_v11 = vpop.f32.mrf.mxu0 }
 0x4c6   :  { %v635_v15 = vadd.f32 %v1574_v9, %v634_v11  ;;  %v763_v9 = vpop.permute.xlu0 %762 }
 0x4c7   :  { %v768_v41 = vsel %vm275_vm3, %v763_v9, 0 }
 0x4c8   :  { %784 = vrot.lane.b32.xlu0 %v635_v15, %s1355_s27  ;;  %723 = vrot.lane.b32.xlu1 %v635_v15, %s1358_s30  ;;  %v664_v16 = vadd.f32 %v663_v14, %v635_v15 }
 0x4ca   :  { %v665_v17 = vsel %vm275_vm3, %v664_v16, -inf }
 0x4cb   :  { %666 = vmax.xlane.f32.xlu2 %v665_v17 }
 0x4cd   :  { %v636_v19 = vpop.f32.mrf.mxu0 }
 0x4ce   :  { %v822_v34 = vpop.permute.xlu0 %821 }
 0x4e3   :  { %677 = vrot.lane.b32.xlu2 %v1624_v20, %s1353_s0  ;;  %v490_v22 = vpop.xlane.xlu1 %489  ;;  %s1363_s0 = smov 8  }
 0x4e4   :  { %1296 = vrcp.f32 %v490_v22 }
 0x4ea   :  { %v1297_v25 = vpop.eup %1296 }
 0x4eb   :  { %v492_v28 = vmul.f32 %v1297_v25, %v1295_v3 }
 0x4ed   :  { %v493_v29 = vpack.c.bf16 %v492_v28, %v492_v28 }
 0x4ef   :  { %1185 = vmatmul.msk.bf16.vlgmr.msrb.gmra.mxu1 %vm275_vm3, %v493_v29 }
 0x4fb   :  { %v824_v12 = vpop.permute.xlu1 %823 }
 0x4fc   :  { %v829_v33 = vsel %vm275_vm3, %v824_v12, 0 }
 0x4fd   :  { %838 = vmatpush.bf16.xpose.msrb.mxu0 %v829_v33 }
 0x4ff   :  { %1191 = vmatmul.msk.bf16.vlgmr.msra.gmra.mxu1 %vm275_vm3, %v699_v30 }
 0x504   :  { %1195 = vmatmul.msk.bf16.vlgmr.msrb.gmra.mxu0 %vm275_vm3, %v822_v34 }
 0x53a   :  { %v724_v48 = vpop.permute.xlu1 %723  ;;  %v785_v6 = vpop.permute.xlu0 %784 }
 0x53e   :  { %v667_v35 = vpop.xlane.xlu2 %666 }
 0x53f   :  { %v668_v36 = vsub.f32 %v664_v16, %v667_v35 }
 0x541   :  { %v669_v37 = vmul.f32 1.442695, %v668_v36 }
 0x543   :  { %1298 = vpow2.f32 %v669_v37 }
 0x546   :  { %v678_v39 = vpop.permute.xlu2 %677 }
 0x547   :  { %v683_v40 = vsel %vm314_vm10, %v678_v39, 0 }
 0x548   :  { %692 = vmatpush.bf16.msrb.mxu3 %v683_v40 }
 0x549   :  { %v1299_v42 = vpop.eup %1298 }
 0x54a   :  { %v671_v43 = vsel %vm275_vm3, %v1299_v42, 0.0 }
 0x54b   :  { %672 = vadd.xlane.f32.xlu2 %v671_v43 }
 0x54c   :  { %777 = vmatpush.bf16.xpose.msra.mxu3 %v768_v41 }
 0x563   :  { %760 = vrot.lane.b32.xlu2 %v1624_v20, %s1355_s27 }
 0x56b   :  { %845 = vrot.lane.b32.xlu2 %v635_v15, %s1360_s1 }
 0x56c   :  { %v1716_v44 = vpop.f32.mrf.mxu1 }
 0x574   :  { %v513_v45 = vpop.f32.mrf.mxu1 }
 0x57c   :  { %v717_v46 = vpop.f32.mrf.mxu1 }
 0x57d   :  { %v721_v47 = vmul.f32 0.35355338, %v717_v46 }
 0x57f   :  { %v726_v49 = vadd.f32 %v724_v48, %v721_v47 }
 0x581   :  { %v840_v50 = vpop.f32.mrf.mxu0  ;;  %v727_v51 = vsel %vm275_vm3, %v726_v49, -inf }
 0x582   :  { %728 = vmax.xlane.f32.xlu1 %v727_v51  ;;  %v844_v59 = vmul.f32 0.35355338, %v840_v50 }
 0x584   :  { %v719_v52 = vpop.f32.mrf.mxu1 }
 0x589   :  { %v842_v53 = vpop.f32.mrf.mxu0 }
 0x58a   :  { %v1234_v53 = vld [vmem:[%s1830_s3] sm:$0xff] }
 0x5be   :  { %v673_v38 = vpop.xlane.xlu2 %672 }
 0x5bf   :  { %1300 = vrcp.f32 %v673_v38 }
 0x5c5   :  { %v1301_v54 = vpop.eup %1300 }
 0x5c6   :  { %v675_v55 = vmul.f32 %v1301_v54, %v1299_v42  ;;  %v761_v56 = vpop.permute.xlu2 %760 }
 0x5c8   :  { %v676_v58 = vpack.c.bf16 %v675_v55, %v675_v55 }
 0x5ca   :  { %1190 = vmatmul.msk.bf16.vlgmr.msrb.gmra.mxu3 %vm275_vm3, %v676_v58 }
 0x5ce   :  { %v846_v60 = vpop.permute.xlu2 %845 }
 0x5cf   :  { %v848_v21 = vadd.f32 %v846_v60, %v844_v59 }
 0x5d1   :  { %v849_v23 = vsel %vm275_vm3, %v848_v21, -inf }
 0x5d2   :  { %850 = vmax.xlane.f32.xlu2 %v849_v23 }
 0x5da   :  { %1193 = vmatmul.msk.bf16.vlgmr.msra.gmra.mxu3 %vm275_vm3, %v761_v56 }
 0x5ea   :  { %739 = vrot.lane.b32.xlu2 %v1624_v20, %s1359_s17 }
 0x5f5   :  { %v729_v18 = vpop.xlane.xlu1 %728 }
 0x5f6   :  { %v730_v61 = vsub.f32 %v726_v49, %v729_v18  ;;  %v1235_v49 = vld [vmem:[%s1830_s3 + $0x8] sm:$0xff] }
 0x5f7   :  { %924 = vmatpush.bf16.msrb.mxu3 %v1235_v49  ;;  %v1276_v49 = vld [vmem:[%s1836_s9 + $0x3] ss:$0 sm:$0xff] }
 0x5f8   :  { %v731_v62 = vmul.f32 1.442695, %v730_v61 }
 0x5fa   :  { %1302 = vpow2.f32 %v731_v62 }
 0x5fb   :  { %925 = vmatpush.bf16.msrb.mxu3 %v1234_v53  ;;  %v1277_v53 = vld [vmem:[%s1836_s9 + $0x4] ss:$0 sm:$0xff] }
 0x600   :  { %v1303_v24 = vpop.eup %1302 }
 0x601   :  { %v733_v63 = vsel %vm275_vm3, %v1303_v24, 0.0 }
 0x602   :  { %734 = vadd.xlane.f32.xlu1 %v733_v63 }
 0x645   :  { %v851_v0 = vpop.xlane.xlu2 %850 }
 0x646   :  { %v852_v32 = vsub.f32 %v848_v21, %v851_v0  ;;  %v1275_v0 = vld [vmem:[%s1836_s9] ss:$0 sm:$0xff] }
 0x648   :  { %v853_v3 = vmul.f32 1.442695, %v852_v32 }
 0x64a   :  { %1304 = vpow2.f32 %v853_v3  ;;  %v1365_v3 = vmov 32.0  }
 0x64d   :  { %v1725_v1 = vpop.f32.mrf.mxu3  ;;  %v740_v27 = vpop.permute.xlu2 %739 }
 0x64e   :  { %v745_v31 = vsel %vm314_vm10, %v740_v27, 0 }
 0x64f   :  { %754 = vmatpush.bf16.msra.mxu2 %v745_v31 }
 0x650   :  { %v1305_v11 = vpop.eup %1304 }
 0x651   :  { %v855_v14 = vsel %vm275_vm3, %v1305_v11, 0.0 }
 0x655   :  { %v696_v2 = vpop.f32.mrf.mxu3 }
 0x65d   :  { %v779_v4 = vpop.f32.mrf.mxu3 }
 0x65e   :  { %v783_v5 = vmul.f32 0.35355338, %v779_v4 }
 0x660   :  { %v787_v7 = vadd.f32 %v785_v6, %v783_v5 }
 0x662   :  { %v788_v8 = vsel %vm275_vm3, %v787_v7, -inf }
 0x663   :  { %789 = vmax.xlane.f32.xlu0 %v788_v8 }
 0x665   :  { %v781_v10 = vpop.f32.mrf.mxu3 }
 0x66b   :  { %856 = vadd.xlane.f32.xlu0 %v855_v14 }
 0x675   :  { %v735_v15 = vpop.xlane.xlu1 %734 }
 0x676   :  { %1306 = vrcp.f32 %v735_v15 }
 0x67c   :  { %v1307_v16 = vpop.eup %1306 }
 0x67d   :  { %v737_v17 = vmul.f32 %v1307_v16, %v1303_v24 }
 0x67f   :  { %v738_v19 = vpack.c.bf16 %v737_v17, %v737_v17  ;;  %861 = vrot.lane.b32.xlu0 %v1624_v20, %s1362_s24  ;;  %s1366_s24 = smov [#allocation2]  }
 0x681   :  { %1192 = vmatmul.msk.bf16.vlgmr.msra.gmra.mxu2 %vm275_vm3, %v738_v19 }
 0x6d6   :  { %v790_v22 = vpop.xlane.xlu0 %789 }
 0x6d7   :  { %v791_v25 = vsub.f32 %v787_v7, %v790_v22 }
 0x6d9   :  { %v792_v28 = vmul.f32 1.442695, %v791_v25 }
 0x6db   :  { %1308 = vpow2.f32 %v792_v28 }
 0x6de   :  { %v857_v9 = vpop.xlane.xlu0 %856 }
 0x6df   :  { %1310 = vrcp.f32 %v857_v9 }
 0x6e1   :  { %v1309_v29 = vpop.eup %1308 }
 0x6e2   :  { %v794_v30 = vsel %vm275_vm3, %v1309_v29, 0.0 }
 0x6e3   :  { %795 = vadd.xlane.f32.xlu1 %v794_v30 }
 0x6e5   :  { %v1311_v12 = vpop.eup %1310 }
 0x6e6   :  { %v859_v33 = vmul.f32 %v1311_v12, %v1305_v11  ;;  %v1237_v12 = vld [vmem:[%s1831_s4 + $0x8] sm:$0xff] }
 0x6e8   :  { %v860_v36 = vpack.c.bf16 %v859_v33, %v859_v33 }
 0x6f1   :  { %v862_v34 = vpop.permute.xlu0 %861 }
 0x6f2   :  { %v867_v35 = vsel %vm314_vm10, %v862_v34, 0  ;;  %v1236_v34 = vld [vmem:[%s1831_s4] sm:$0xff] }
 0x6f3   :  { %876 = vmatpush.bf16.msrb.mxu2 %v867_v35 }
 0x6f6   :  { %1196 = vmatmul.msk.bf16.vlgmr.msrb.gmra.mxu2 %vm275_vm3, %v860_v36 }
 0x6fc   :  { %800 = vrot.lane.b32.xlu1 %v1624_v20, %s1350_s2  ;;  %s1364_s2 = smov 24  }
 0x704   :  { %v756_v37 = vpop.f32.mrf.mxu2 }
 0x705   :  { %v1258_v39 = vpack.i.bf16 %v756_v37, %v1658_v13 }
 0x707   :  { %1259 = vrot.lane.b32.xlu2 %v1258_v39, %s1363_s0 }
 0x70c   :  { %v758_v40 = vpop.f32.mrf.mxu2 }
 0x756   :  { %v796_v41 = vpop.xlane.xlu1 %795 }
 0x757   :  { %1312 = vrcp.f32 %v796_v41 }
 0x758   :  { %1314 = vrcp.f32 %v1365_v3 }
 0x75d   :  { %v1313_v42 = vpop.eup %1312 }
 0x75e   :  { %v798_v43 = vmul.f32 %v1313_v42, %v1309_v29  ;;  %v1315_v4 = vpop.eup %1314 }
 0x75f   :  { %v939_v5 = vmul.f32 32.0, %v1315_v4  ;;  %vm943_vm12 = vweird.f32 %v1315_v4 }
 0x760   :  { %v799_v47 = vpack.c.bf16 %v798_v43, %v798_v43 }
 0x761   :  { %v940_v6 = vsub.f32 1.0, %v939_v5 }
 0x763   :  { %v941_v7 = vmul.f32 %v1315_v4, %v940_v6 }
 0x765   :  { %v942_v8 = vadd.f32 %v1315_v4, %v941_v7 }
 0x767   :  { %v1769_v10 = vsel %vm943_vm12, %v1315_v4, %v942_v8 }
 0x76e   :  { %v801_v45 = vpop.permute.xlu1 %800 }
 0x76f   :  { %v806_v46 = vsel %vm314_vm10, %v801_v45, 0 }
 0x770   :  { %815 = vmatpush.bf16.msrb.mxu1 %v806_v46 }
 0x773   :  { %1194 = vmatmul.msk.bf16.vlgmr.msrb.gmra.mxu1 %vm275_vm3, %v799_v47 }
 0x774   :  { %1018 = vmatpush.bf16.msra.mxu1 %v1237_v12 }
 0x778   :  { %1019 = vmatpush.bf16.msra.mxu1 %v1236_v34 }
 0x779   :  { %v878_v48 = vpop.f32.mrf.mxu2 }
 0x77a   :  { %v1268_v20 = vpack.i.bf16 %v878_v48, %v1716_v44  ;;  %v1260_v44 = vpop.permute.xlu2 %1259 }
 0x77b   :  { %v1262_v38 = vunpack.i.h.bf16 %v1260_v44  ;;  %v1261_v54 = vunpack.i.l.bf16 %v1260_v44 }
 0x77c   :  { %1269 = vrot.lane.b32.xlu2 %v1268_v20, %s1364_s2  ;;  %s1121_s2 = sshll.u32 %s1366_s24, 4  ;;  %s1122_s2 = int_to_ptr.vmem [resolvable:$true] %s1121_s2 }
 0x77d   :  { %v894_v60 = vsel %vm275_vm3, %v1725_v1, %v1262_v38 }
 0x781   :  { %v880_v13 = vpop.f32.mrf.mxu2 }
 0x7d6   :  { %v1270_v55 = vpop.permute.xlu2 %1269 }
 0x7d7   :  { %v1272_v21 = vunpack.i.h.bf16 %v1270_v55  ;;  %v1271_v23 = vunpack.i.l.bf16 %v1270_v55 }
 0x7f0   :  { %v817_v50 = vpop.f32.mrf.mxu1 }
 0x7f1   :  { %v1263_v51 = vpack.i.bf16 %v817_v50, %v1697_v57  ;;  %v527_v57 = vsel %vm275_vm3, %v1632_v26, %v1261_v54 }
 0x7f3   :  { %1264 = vrot.lane.b32.xlu0 %v1263_v51, %s1352_s25 }
 0x7f8   :  { %v819_v52 = vpop.f32.mrf.mxu1 }
 0x865   :  { %v1265_v56 = vpop.permute.xlu0 %1264 }
 0x866   :  { %v1267_v58 = vunpack.i.h.bf16 %v1265_v56  ;;  %v1266_v59 = vunpack.i.l.bf16 %v1265_v56 }
 0x868   :  { %v895_v18 = vsel %vm135_vm4, %v894_v60, %v1267_v58  ;;  %v528_v61 = vsel %vm135_vm4, %v527_v57, %v1266_v59 }
 0x869   :  { %v896_v62 = vsel %vm529_vm11, %v895_v18, %v1272_v21  ;;  %v530_v24 = vsel %vm529_vm11, %v528_v61, %v1271_v23  ;;  %v1239_v21 = vld [vmem:[%s1832_s5 + $0x8] sm:$0xff]  ;;  %v1238_v23 = vld [vmem:[%s1832_s5] sm:$0xff] }
 0x86a   :  { %v897_v63 = vpack.c.bf16 %v896_v62, %v530_v24  ;;  %1055 = vmatpush.bf16.msra.mxu0 %v1239_v21  ;;  %v1278_v61 = vld [vmem:[%s1836_s9 + $0x1] ss:$0 sm:$0xff] }
 0x86c   :  { %1205 = vmatmul.msk.bf16.vlgmr.msrb.gmra.mxu3 %vm65_vm2, %v897_v63 }
 0x86e   :  { %1056 = vmatpush.bf16.msra.mxu0 %v1238_v23 }
 0x8ef   :  { %v927_v27 = vpop.f32.mrf.mxu3 }
 0x8f0   :  { %v1761_v1 = vadd.f32 %v1275_v0, %v927_v27 }
 0x8f2   :  { %v932_v26 = vsel %vm65_vm2, %v1761_v1, 0.0 }
 0x8f3   :  { %933 = vadd.xlane.f32.xlu1 %v932_v26  ;;  %v1279_v26 = vld [vmem:[%s1836_s9 + $0x2] ss:$0 sm:$0xff] }
 0x8f7   :  { %v929_v31 = vpop.f32.mrf.mxu3 }
 0x8f8   :  { %v1765_v2 = vadd.f32 %v1275_v0, %v929_v31 }
 0x8fa   :  { %v935_v32 = vsel %vm65_vm2, %v1765_v2, 0.0 }
 0x8fb   :  { %936 = vadd.xlane.f32.xlu0 %v935_v32 }
 0x966   :  { %v934_v11 = vpop.xlane.xlu1 %933 }
 0x967   :  { %v945_v14 = vmul.f32 %v1769_v10, %v934_v11 }
 0x969   :  { %v947_v15 = vsub.f32 %v1761_v1, %v945_v14 }
 0x96b   :  { %v949_v16 = vmul.f32 %v947_v15, %v947_v15 }
 0x96d   :  { %v951_v17 = vsel %vm65_vm2, %v949_v16, 0.0 }
 0x96e   :  { %v937_v19 = vpop.xlane.xlu0 %936  ;;  %952 = vadd.xlane.f32.xlu2 %v951_v17 }
 0x96f   :  { %v946_v22 = vmul.f32 %v1769_v10, %v937_v19 }
 0x971   :  { %v948_v25 = vsub.f32 %v1765_v2, %v946_v22 }
 0x973   :  { %v950_v28 = vmul.f32 %v948_v25, %v948_v25 }
 0x975   :  { %v954_v29 = vsel %vm65_vm2, %v950_v28, 0.0 }
 0x976   :  { %955 = vadd.xlane.f32.xlu1 %v954_v29 }
 0x9e1   :  { %v953_v30 = vpop.xlane.xlu2 %952 }
 0x9e2   :  { %v957_v9 = vmul.f32 %v953_v30, %v1769_v10 }
 0x9e4   :  { %v959_v33 = vadd.f32 1e-05, %v957_v9 }
 0x9e6   :  { %1316 = vrsqrt.f32 %v959_v33  ;;  %vm967_vm14 = vweird.f32 %v959_v33 }
 0x9e9   :  { %v956_v35 = vpop.xlane.xlu1 %955 }
 0x9ea   :  { %v958_v36 = vmul.f32 %v956_v35, %v1769_v10 }
 0x9ec   :  { %v1317_v37 = vpop.eup %1316  ;;  %v960_v39 = vadd.f32 1e-05, %v958_v36 }
 0x9ed   :  { %v962_v40 = vmul.f32 %v1317_v37, %v959_v33  ;;  %vm968_vm13 = vweird.f32 %v1317_v37 }
 0x9ee   :  { %1318 = vrsqrt.f32 %v960_v39  ;;  %vm969_vm15 = vmor %vm967_vm14, %vm968_vm13  ;;  %vm977_vm1 = vweird.f32 %v960_v39 }
 0x9ef   :  { %v963_v41 = vmul.f32 %v1317_v37, %v962_v40 }
 0x9f1   :  { %v964_v42 = vmul.f32 0.5, %v963_v41 }
 0x9f3   :  { %v965_v43 = vsub.f32 1.5, %v964_v42 }
 0x9f4   :  { %v1319_v45 = vpop.eup %1318 }
 0x9f5   :  { %v966_v46 = vmul.f32 %v1317_v37, %v965_v43  ;;  %v972_v47 = vmul.f32 %v1319_v45, %v960_v39  ;;  %vm978_vm0 = vweird.f32 %v1319_v45 }
 0x9f6   :  { %vm979_vm3 = vmor %vm977_vm1, %vm978_vm0 }
 0x9f7   :  { %v970_v48 = vsel %vm969_vm15, %v1317_v37, %v966_v46  ;;  %v973_v20 = vmul.f32 %v1319_v45, %v972_v47 }
 0x9f8   :  { %v981_v50 = vmul.f32 %v970_v48, %v947_v15  ;;  %v1281_v48 = vld [vmem:[%s1836_s9 + $0x6] ss:$0 sm:$0xff] }
 0x9f9   :  { %v974_v13 = vmul.f32 0.5, %v973_v20 }
 0x9fa   :  { %v984_v44 = vmul.f32 %v1276_v49, %v981_v50 }
 0x9fb   :  { %v975_v51 = vsub.f32 1.5, %v974_v13 }
 0x9fc   :  { %v987_v55 = vadd.f32 %v1277_v53, %v984_v44 }
 0x9fd   :  { %v976_v52 = vmul.f32 %v1319_v45, %v975_v51 }
 0x9fe   :  { %v989_v59 = vadd.f32 %v987_v55, %v1761_v1 }
 0x9ff   :  { %v980_v38 = vsel %vm979_vm3, %v1319_v45, %v976_v52  ;;  %v1280_v45 = vld [vmem:[%s1836_s9 + $0x5] ss:$0 sm:$0xff]  ;;  %s1367_s9 = smov 128  }
 0xa00   :  { %v982_v54 = vmul.f32 %v980_v38, %v948_v25 }
 0xa02   :  { %v985_v56 = vmul.f32 %v1276_v49, %v982_v54 }
 0xa04   :  { %v988_v58 = vadd.f32 %v1277_v53, %v985_v56 }
 0xa06   :  { %v990_v60 = vadd.f32 %v988_v58, %v1765_v2 }
 0xa08   :  { %v991_v57 = vpack.c.bf16 %v990_v60, %v989_v59 }
 0xa0a   :  { %1214 = vmatmul.msk.bf16.vlgmr.msra.gmra.mxu1 %vm65_vm2, %v991_v57 }
 0xa87   :  { %v1021_v18 = vpop.f32.mrf.mxu1 }
 0xa88   :  { %v1022_v62 = vadd.f32 %v1278_v61, %v1021_v18 }
 0xa8a   :  { %v1026_v0 = vmax.f32 %v1022_v62, 0.0 }
 0xa8f   :  { %v1023_v24 = vpop.f32.mrf.mxu1 }
 0xa90   :  { %v1024_v63 = vadd.f32 %v1278_v61, %v1023_v24 }
 0xa92   :  { %v1027_v27 = vmax.f32 %v1024_v63, 0.0 }
 0xa94   :  { %v1028_v1 = vpack.c.bf16 %v1027_v27, %v1026_v0 }
 0xa96   :  { %1223 = vmatmul.msk.bf16.vlgmr.msra.gmra.mxu0 %vm65_vm2, %v1028_v1 }
 0xb13   :  { %v1058_v31 = vpop.f32.mrf.mxu0 }
 0xb14   :  { %v1059_v2 = vadd.f32 %v1279_v26, %v1058_v31 }
 0xb16   :  { %v1063_v32 = vadd.f32 %v1059_v2, %v989_v59 }
 0xb18   :  { %v1065_v3 = vsel %vm65_vm2, %v1063_v32, 0.0 }
 0xb19   :  { %1066 = vadd.xlane.f32.xlu0 %v1065_v3 }
 0xb1b   :  { %v1060_v4 = vpop.f32.mrf.mxu0 }
 0xb1c   :  { %v1061_v5 = vadd.f32 %v1279_v26, %v1060_v4 }
 0xb1e   :  { %v1064_v6 = vadd.f32 %v1061_v5, %v990_v60 }
 0xb20   :  { %v1068_v7 = vsel %vm65_vm2, %v1064_v6, 0.0 }
 0xb21   :  { %1069 = vadd.xlane.f32.xlu2 %v1068_v7 }
 0xb8c   :  { %v1067_v8 = vpop.xlane.xlu0 %1066 }
 0xb8d   :  { %v1071_v11 = vmul.f32 %v1067_v8, %v1769_v10 }
 0xb8f   :  { %v1073_v14 = vsub.f32 %v1063_v32, %v1071_v11 }
 0xb91   :  { %v1075_v15 = vmul.f32 %v1073_v14, %v1073_v14 }
 0xb93   :  { %v1077_v16 = vsel %vm65_vm2, %v1075_v15, 0.0 }
 0xb94   :  { %v1070_v17 = vpop.xlane.xlu2 %1069  ;;  %1078 = vadd.xlane.f32.xlu1 %v1077_v16 }
 0xb95   :  { %v1072_v19 = vmul.f32 %v1070_v17, %v1769_v10 }
 0xb97   :  { %v1074_v22 = vsub.f32 %v1064_v6, %v1072_v19 }
 0xb99   :  { %v1076_v25 = vmul.f32 %v1074_v22, %v1074_v22 }
 0xb9b   :  { %v1080_v28 = vsel %vm65_vm2, %v1076_v25, 0.0 }
 0xb9c   :  { %1081 = vadd.xlane.f32.xlu0 %v1080_v28 }
 0xc07   :  { %v1079_v29 = vpop.xlane.xlu1 %1078 }
 0xc08   :  { %v1083_v30 = vmul.f32 %v1079_v29, %v1769_v10 }
 0xc0a   :  { %v1085_v9 = vadd.f32 1e-05, %v1083_v30 }
 0xc0c   :  { %1320 = vrsqrt.f32 %v1085_v9  ;;  %vm1093_vm5 = vweird.f32 %v1085_v9 }
 0xc0f   :  { %v1082_v12 = vpop.xlane.xlu0 %1081 }
 0xc10   :  { %v1084_v33 = vmul.f32 %v1082_v12, %v1769_v10 }
 0xc12   :  { %v1321_v34 = vpop.eup %1320  ;;  %v1086_v35 = vadd.f32 1e-05, %v1084_v33 }
 0xc13   :  { %v1088_v36 = vmul.f32 %v1321_v34, %v1085_v9  ;;  %vm1094_vm4 = vweird.f32 %v1321_v34 }
 0xc14   :  { %1322 = vrsqrt.f32 %v1086_v35  ;;  %vm1095_vm6 = vmor %vm1093_vm5, %vm1094_vm4  ;;  %vm1103_vm8 = vweird.f32 %v1086_v35 }
 0xc15   :  { %v1089_v37 = vmul.f32 %v1321_v34, %v1088_v36 }
 0xc17   :  { %v1090_v39 = vmul.f32 0.5, %v1089_v37 }
 0xc19   :  { %v1091_v40 = vsub.f32 1.5, %v1090_v39 }
 0xc1a   :  { %v1323_v41 = vpop.eup %1322 }
 0xc1b   :  { %v1092_v42 = vmul.f32 %v1321_v34, %v1091_v40  ;;  %v1098_v43 = vmul.f32 %v1323_v41, %v1086_v35  ;;  %vm1104_vm7 = vweird.f32 %v1323_v41 }
 0xc1c   :  { %vm1105_vm9 = vmor %vm1103_vm8, %vm1104_vm7 }
 0xc1d   :  { %v1096_v46 = vsel %vm1095_vm6, %v1321_v34, %v1092_v42  ;;  %v1099_v47 = vmul.f32 %v1323_v41, %v1098_v43 }
 0xc1e   :  { %v1107_v10 = vmul.f32 %v1096_v46, %v1073_v14 }
 0xc1f   :  { %v1100_v20 = vmul.f32 0.5, %v1099_v47 }
 0xc20   :  { %v1110_v13 = vmul.f32 %v1280_v45, %v1107_v10 }
 0xc21   :  { %v1101_v49 = vsub.f32 1.5, %v1100_v20 }
 0xc22   :  { %v1113_v50 = vadd.f32 %v1281_v48, %v1110_v13 }
 0xc23   :  { %v1102_v51 = vmul.f32 %v1323_v41, %v1101_v49 }
 0xc24   :  { %1115 = vst.msk [vmem:[#allocation2] sm:$0xff] %vm65_vm2, %v1113_v50 }
 0xc25   :  { %v1106_v52 = vsel %vm1105_vm9, %v1323_v41, %v1102_v51 }
 0xc26   :  { %v1108_v53 = vmul.f32 %v1106_v52, %v1074_v22 }
 0xc28   :  { %v1111_v44 = vmul.f32 %v1280_v45, %v1108_v53 }
 0xc2a   :  { %v1114_v38 = vadd.f32 %v1281_v48, %v1111_v44 }
 0xc2c   :  { %1116 = vst.msk [vmem:[#allocation2 + $0x8] sm:$0xff] %vm65_vm2, %v1114_v38 }
 0xc2d   :  { %1129 = dma.vmem_to_hbm [thread:$0]  %s1122_s2, 256, %s1124_s28, [#allocation3], %s1367_s9, %s1367_s9, %s1363_s0  }
 0xc2e   :  { %1348 = dma.done.wait [#allocation3], 256  }
 0xc2f   :  { %1349 = vsyncadd [#allocation3], 4294967040 }
 0xc30   :  { %1134 = vsyncpa [#allocation3], 1 }

</bundles_post_ra>
